<compile_context>
chip_gen: v7x
topology: tpu7x:2x2x1
jax: 0.10.0
libtpu: 0.0.40
codegen_flags: <defaults>
</compile_context>

<pallas_src>
import functools
import numpy as np
import jax
import jax.numpy as jnp
from jax import lax
from jax.experimental import pallas as pl
from jax.experimental.pallas import tpu as pltpu

_SOBEL = ((1.0, 0.0, -1.0),
          (2.0, 0.0, -2.0),
          (1.0, 0.0, -1.0))


def _leaky(v, slope):
    return jnp.where(v >= 0.0, v, slope * v)


def _tree_sum(terms):
    """Pairwise tree reduction -> independent partial sums (better VALU ILP)."""
    terms = list(terms)
    while len(terms) > 1:
        nxt = [terms[i] + terms[i + 1] for i in range(0, len(terms) - 1, 2)]
        if len(terms) % 2:
            nxt.append(terms[-1])
        terms = nxt
    return terms[0]


def _rgbd_kernel(x_ref, m_ref, w1_ref, b1_ref, w2_ref, b2_ref, wf_ref, bf_ref,
                 out_ref, *, W):
    """One grid step: x_ref (C, L) with L = B_blk*H*W -> out_ref (Cout, L)."""
    f32 = jnp.float32
    x = x_ref[...]                       # (C, L), lane-dense, batch folded
    L = x.shape[1]
    masks = m_ref[...]                   # (9, L) per-tap validity (per image)
    mask_rows = [masks[t:t + 1, :] for t in range(9)]   # hoisted, reused twice

    def dot32(a, b):
        return jnp.dot(a, b, preferred_element_type=f32)

    def taps_of(a):
        """Nine spatially shifted, zero-padded copies of `a` (each (C, L))."""
        taps = []
        for ky in range(3):
            for kx in range(3):
                t = ky * 3 + kx
                off = (ky - 1) * W + (kx - 1)
                if off == 0:
                    taps.append(a)                       # center tap: no shift
                else:
                    # rolled[p] = a[(p + off) mod L]; out-of-image (including
                    # cross-image wrap from the batch fold) is masked to 0.
                    rolled = pltpu.roll(a, shift=(-off) % L, axis=1)
                    taps.append(rolled * mask_rows[t])
        return taps

    # ---- DenseBlock.conv1 : single (C, 9C) @ (9C, L) MXU dot + leaky(0.2) ---
    x_taps = taps_of(x)
    x_slab = jnp.concatenate(x_taps, axis=0)             # (9C, L)
    y1 = _leaky(dot32(w1_ref[...], x_slab) + b1_ref[...], 0.2)

    # ---- DenseBlock.conv2 : single (C, 18C) @ (18C, L) dot + leaky(0.2) -----
    y1_slab = jnp.concatenate(taps_of(y1), axis=0)       # (9C, L)
    cat_slab = jnp.concatenate([x_slab, y1_slab], axis=0)  # (18C, L)
    y2 = _leaky(dot32(w2_ref[...], cat_slab) + b2_ref[...], 0.2)

    # ---- Sobelxy : fixed depthwise filters on the VPU from shared x taps ----
    sx_terms, sy_terms = [], []
    for ky in range(3):
        for kx in range(3):
            t = ky * 3 + kx
            cx = _SOBEL[ky][kx]
            cy = _SOBEL[kx][ky]          # transposed filter for convy
            if cx != 0.0:
                sx_terms.append(x_taps[t] * cx)
            if cy != 0.0:
                sy_terms.append(x_taps[t] * cy)
    s = jnp.abs(_tree_sum(sx_terms)) + jnp.abs(_tree_sum(sy_terms))

    # ---- fused convdown + convup + bias : single (Cout, 4C) @ (4C, L) dot ---
    feat = jnp.concatenate([x, y1, y2, s], axis=0)       # (4C, L)
    out_ref[...] = _leaky(dot32(wf_ref[...], feat) + bf_ref[...], 0.1
                          ).astype(out_ref.dtype)


def _tap_masks(H, W, b_blk):
    """(9, b_blk*H*W) f32 validity masks for a zero-padded 3x3 conv, tiled per
    image so rolls across image boundaries (batch fold) are zeroed."""
    ys = np.arange(H)[:, None]
    xs = np.arange(W)[None, :]
    rows = []
    for ky in range(3):
        for kx in range(3):
            dy, dx = ky - 1, kx - 1
            valid = ((ys + dy >= 0) & (ys + dy < H)
                     & (xs + dx >= 0) & (xs + dx < W))
            rows.append(np.tile(valid.reshape(H * W), b_blk))
    return jnp.asarray(np.stack(rows, axis=0), jnp.float32)


def _pick_batch_block(n, hw, max_lanes=8192):
    """Fold as much batch into lanes as possible while keeping >= 2 parallel
    grid steps (v7x has 2 TensorCores) and a bounded lane width."""
    max_blk = max(1, min(n, max_lanes // hw))
    best = 1
    for blk in range(1, max_blk + 1):
        if n % blk == 0 and (n // blk >= 2 or n == 1):
            best = blk
    return best


def rgbd_forward(x_nchw, params, batch_block=None):
    """RGBD forward. x_nchw: (N, C, H, W) float32. Returns (N, Cout, H, W)."""
    w1, b1, w2, b2, wd, bd, wu, bu = params
    N, C, H, W = x_nchw.shape
    Cout = wd.shape[1]
    HW = H * W

    if batch_block is None:
        batch_block = _pick_batch_block(N, HW)
    assert N % batch_block == 0
    G = N // batch_block
    L = batch_block * HW

    # (N, C, H, W) -> lane-dense (C, N*HW): channels on sublanes, batch folded
    # into the lane axis; each grid step owns `batch_block` consecutive images.
    x_lanes = (x_nchw.astype(jnp.float32)
               .reshape(N, C, HW).transpose(1, 0, 2).reshape(C, N * HW))
    masks = _tap_masks(H, W, batch_block)                       # (9, L)

    # Repack weights so each conv is a single deep MXU dot.
    # conv1: out[o] = sum_t sum_i w1[t,i,o] * tap_t[i]  ->  (C, 9C)
    w1k = w1.reshape(9, C, C).transpose(2, 0, 1).reshape(C, 9 * C)
    # conv2: input is cat(x, y1); slab rows are [x taps (9C) ; y1 taps (9C)].
    w2r = w2.reshape(9, 2, C, C)
    w2k = jnp.concatenate(
        [w2r[:, 0].transpose(2, 0, 1).reshape(C, 9 * C),
         w2r[:, 1].transpose(2, 0, 1).reshape(C, 9 * C)], axis=1)  # (C, 18C)
    # convdown (3C->Cout) and convup (C->Cout) fused over feat = [x;y1;y2;s].
    wfk = jnp.concatenate([wd.T, wu.T], axis=1)                  # (Cout, 4C)
    b1k = b1.T                                                   # (C, 1)
    b2k = b2.T                                                   # (C, 1)
    bfk = (bd + bu).T                                            # (Cout, 1)

    def full(a):
        nd = a.ndim
        return pl.BlockSpec(a.shape, lambda g, _nd=nd: (0,) * _nd)

    flops = 2 * N * HW * (27 * C * C + 4 * C * Cout)
    bytes_accessed = 4 * (N * C * HW + N * Cout * HW + masks.size
                          + w1k.size + w2k.size + wfk.size
                          + b1k.size + b2k.size + bfk.size)

    kernel = functools.partial(_rgbd_kernel, W=W)
    out_lanes = pl.pallas_call(
        kernel,
        out_shape=jax.ShapeDtypeStruct((Cout, N * HW), jnp.float32),
        grid=(G,),
        in_specs=[pl.BlockSpec((C, L), lambda g: (0, g)),
                  full(masks),
                  full(w1k), full(b1k), full(w2k), full(b2k),
                  full(wfk), full(bfk)],
        out_specs=pl.BlockSpec((Cout, L), lambda g: (0, g)),
        compiler_params=pltpu.CompilerParams(
            dimension_semantics=("parallel",)),
        cost_estimate=pl.CostEstimate(flops=flops, transcendentals=0,
                                      bytes_accessed=bytes_accessed),
    )(x_lanes, masks, w1k, b1k, w2k, b2k, wfk, bfk)

    return (out_lanes.reshape(Cout, N, HW).transpose(1, 0, 2)
            .reshape(N, Cout, H, W))


def init_params(key, in_channels, out_channels):
    """Deterministic synthetic parameters (HWIO-style column layouts)."""
    C, Co = in_channels, out_channels
    ks = jax.random.split(key, 8)
    sc = 0.1
    w1 = sc * jax.random.normal(ks[0], (9 * C, C), jnp.float32)        # conv1
    b1 = sc * jax.random.normal(ks[1], (1, C), jnp.float32)
    w2 = sc * jax.random.normal(ks[2], (9 * 2 * C, C), jnp.float32)    # conv2
    b2 = sc * jax.random.normal(ks[3], (1, C), jnp.float32)
    wd = sc * jax.random.normal(ks[4], (3 * C, Co), jnp.float32)       # convdown
    bd = sc * jax.random.normal(ks[5], (1, Co), jnp.float32)
    wu = sc * jax.random.normal(ks[6], (C, Co), jnp.float32)           # convup
    bu = sc * jax.random.normal(ks[7], (1, Co), jnp.float32)
    return (w1, b1, w2, b2, wd, bd, wu, bu)


def rgbd_reference(x_nchw, params):
    """Pure-JAX reference mirroring the PyTorch module (for verification)."""
    w1, b1, w2, b2, wd, bd, wu, bu = params
    x = jnp.transpose(x_nchw, (0, 2, 3, 1)).astype(jnp.float32)
    C = x.shape[-1]
    dn = ('NHWC', 'HWIO', 'NHWC')
    P = lax.Precision.HIGHEST

    def conv3(inp, wcol, b):
        w = wcol.reshape(3, 3, inp.shape[-1], wcol.shape[-1])
        y = lax.conv_general_dilated(inp, w, (1, 1), ((1, 1), (1, 1)),
                                     dimension_numbers=dn, precision=P)
        return y + b

    y1 = _leaky(conv3(x, w1, b1), 0.2)
    y2 = _leaky(conv3(jnp.concatenate([x, y1], -1), w2, b2), 0.2)
    feat = jnp.concatenate([x, y1, y2], -1)
    x1 = jnp.einsum('nhwc,cd->nhwd', feat, wd, precision=P) + bd

    fx = jnp.array(_SOBEL, jnp.float32)
    wx = jnp.broadcast_to(fx[:, :, None, None], (3, 3, 1, C))
    wy = jnp.broadcast_to(fx.T[:, :, None, None], (3, 3, 1, C))
    sx = lax.conv_general_dilated(x, wx, (1, 1), ((1, 1), (1, 1)),
                                  dimension_numbers=dn, feature_group_count=C,
                                  precision=P)
    sy = lax.conv_general_dilated(x, wy, (1, 1), ((1, 1), (1, 1)),
                                  dimension_numbers=dn, feature_group_count=C,
                                  precision=P)
    s = jnp.abs(sx) + jnp.abs(sy)
    x2 = jnp.einsum('nhwc,cd->nhwd', s, wu, precision=P) + bu
    out = _leaky(x1 + x2, 0.1)
    return jnp.transpose(out, (0, 3, 1, 2))


if __name__ == "__main__":
    key = jax.random.PRNGKey(0)
    k_x, k_p = jax.random.split(key)
    C_in, C_out, H, W = 4, 8, 16, 16
    params = init_params(k_p, C_in, C_out)

    # N=4 exercises the batch-folded path (batch_block=2, 2 parallel steps);
    # N=2 exercises the unfolded path (batch_block=1).
    for N in (4, 2):
        x = jax.random.normal(jax.random.fold_in(k_x, N),
                              (N, C_in, H, W), jnp.float32)
        out = jax.block_until_ready(rgbd_forward(x, params))
        ref = jax.block_until_ready(rgbd_reference(x, params))
        assert out.shape == (N, C_out, H, W), out.shape
        # Tolerance leaves headroom for MXU f32 multi-pass numerics; any
        # layout / shift / weight-packing bug shows up as O(0.1-1) error.
        if not np.allclose(np.asarray(out), np.asarray(ref),
                           atol=5e-3, rtol=5e-3):
            err = float(np.max(np.abs(np.asarray(out) - np.asarray(ref))))
            raise AssertionError(
                f"Pallas RGBD kernel mismatch at N={N} (max err {err})")
    print("KERNEL_OK")
</pallas_src>

<mosaic_0001>
module attributes {stable_mosaic.version = 11 : i64} {
  func.func @_rgbd_kernel(%arg0: i32, %arg1: memref<4x512xf32, #tpu.memory_space<vmem>>, %arg2: memref<9x512xf32, #tpu.memory_space<vmem>>, %arg3: memref<4x36xf32, #tpu.memory_space<vmem>>, %arg4: memref<4x1xf32, #tpu.memory_space<vmem>>, %arg5: memref<4x72xf32, #tpu.memory_space<vmem>>, %arg6: memref<4x1xf32, #tpu.memory_space<vmem>>, %arg7: memref<8x16xf32, #tpu.memory_space<vmem>>, %arg8: memref<8x1xf32, #tpu.memory_space<vmem>>, %arg9: memref<8x512xf32, #tpu.memory_space<vmem>>) attributes {dimension_semantics = [#tpu.dimension_semantics<parallel>], iteration_bounds = array<i64: 2>, scalar_prefetch = 0 : i64, scratch_operands = 0 : i64, tpu.core_type = #tpu.core_type<tc>, window_params = [{transform_indices = @transform_0, window_bounds = array<i64: 4, 512>}, {pipeline_mode = #tpu.pipeline_mode<synchronous>, transform_indices = @transform_1, window_bounds = array<i64: 9, 512>}, {pipeline_mode = #tpu.pipeline_mode<synchronous>, transform_indices = @transform_2, window_bounds = array<i64: 4, 36>}, {pipeline_mode = #tpu.pipeline_mode<synchronous>, transform_indices = @transform_3, window_bounds = array<i64: 4, 1>}, {pipeline_mode = #tpu.pipeline_mode<synchronous>, transform_indices = @transform_4, window_bounds = array<i64: 4, 72>}, {pipeline_mode = #tpu.pipeline_mode<synchronous>, transform_indices = @transform_5, window_bounds = array<i64: 4, 1>}, {pipeline_mode = #tpu.pipeline_mode<synchronous>, transform_indices = @transform_6, window_bounds = array<i64: 8, 16>}, {pipeline_mode = #tpu.pipeline_mode<synchronous>, transform_indices = @transform_7, window_bounds = array<i64: 8, 1>}, {transform_indices = @transform_8, window_bounds = array<i64: 8, 512>}]} {
    %c0 = arith.constant 0 : index
    %c0_0 = arith.constant 0 : index
    %0 = vector.load %arg1[%c0, %c0_0] : memref<4x512xf32, #tpu.memory_space<vmem>>, vector<4x512xf32>
    %c0_1 = arith.constant 0 : index
    %c0_2 = arith.constant 0 : index
    %1 = vector.load %arg2[%c0_1, %c0_2] : memref<9x512xf32, #tpu.memory_space<vmem>>, vector<9x512xf32>
    %2 = vector.extract_strided_slice %1 {offsets = [0, 0], sizes = [1, 512], strides = [1, 1]} : vector<9x512xf32> to vector<1x512xf32>
    %3 = vector.extract_strided_slice %1 {offsets = [1, 0], sizes = [1, 512], strides = [1, 1]} : vector<9x512xf32> to vector<1x512xf32>
    %4 = vector.extract_strided_slice %1 {offsets = [2, 0], sizes = [1, 512], strides = [1, 1]} : vector<9x512xf32> to vector<1x512xf32>
    %5 = vector.extract_strided_slice %1 {offsets = [3, 0], sizes = [1, 512], strides = [1, 1]} : vector<9x512xf32> to vector<1x512xf32>
    %6 = vector.extract_strided_slice %1 {offsets = [5, 0], sizes = [1, 512], strides = [1, 1]} : vector<9x512xf32> to vector<1x512xf32>
    %7 = vector.extract_strided_slice %1 {offsets = [6, 0], sizes = [1, 512], strides = [1, 1]} : vector<9x512xf32> to vector<1x512xf32>
    %8 = vector.extract_strided_slice %1 {offsets = [7, 0], sizes = [1, 512], strides = [1, 1]} : vector<9x512xf32> to vector<1x512xf32>
    %9 = vector.extract_strided_slice %1 {offsets = [8, 0], sizes = [1, 512], strides = [1, 1]} : vector<9x512xf32> to vector<1x512xf32>
    %c17_i32 = arith.constant 17 : i32
    %10 = tpu.dynamic_rotate %0 by %c17_i32 dim 1 : vector<4x512xf32>, i32 -> vector<4x512xf32>
    %11 = vector.broadcast %2 : vector<1x512xf32> to vector<4x512xf32>
    %12 = arith.mulf %10, %11 : vector<4x512xf32>
    %c16_i32 = arith.constant 16 : i32
    %13 = tpu.dynamic_rotate %0 by %c16_i32 dim 1 : vector<4x512xf32>, i32 -> vector<4x512xf32>
    %14 = vector.broadcast %3 : vector<1x512xf32> to vector<4x512xf32>
    %15 = arith.mulf %13, %14 : vector<4x512xf32>
    %c15_i32 = arith.constant 15 : i32
    %16 = tpu.dynamic_rotate %0 by %c15_i32 dim 1 : vector<4x512xf32>, i32 -> vector<4x512xf32>
    %17 = vector.broadcast %4 : vector<1x512xf32> to vector<4x512xf32>
    %18 = arith.mulf %16, %17 : vector<4x512xf32>
    %c1_i32 = arith.constant 1 : i32
    %19 = tpu.dynamic_rotate %0 by %c1_i32 dim 1 : vector<4x512xf32>, i32 -> vector<4x512xf32>
    %20 = vector.broadcast %5 : vector<1x512xf32> to vector<4x512xf32>
    %21 = arith.mulf %19, %20 : vector<4x512xf32>
    %c511_i32 = arith.constant 511 : i32
    %22 = tpu.dynamic_rotate %0 by %c511_i32 dim 1 : vector<4x512xf32>, i32 -> vector<4x512xf32>
    %23 = vector.broadcast %6 : vector<1x512xf32> to vector<4x512xf32>
    %24 = arith.mulf %22, %23 : vector<4x512xf32>
    %c497_i32 = arith.constant 497 : i32
    %25 = tpu.dynamic_rotate %0 by %c497_i32 dim 1 : vector<4x512xf32>, i32 -> vector<4x512xf32>
    %26 = vector.broadcast %7 : vector<1x512xf32> to vector<4x512xf32>
    %27 = arith.mulf %25, %26 : vector<4x512xf32>
    %c496_i32 = arith.constant 496 : i32
    %28 = tpu.dynamic_rotate %0 by %c496_i32 dim 1 : vector<4x512xf32>, i32 -> vector<4x512xf32>
    %29 = vector.broadcast %8 : vector<1x512xf32> to vector<4x512xf32>
    %30 = arith.mulf %28, %29 : vector<4x512xf32>
    %c495_i32 = arith.constant 495 : i32
    %31 = tpu.dynamic_rotate %0 by %c495_i32 dim 1 : vector<4x512xf32>, i32 -> vector<4x512xf32>
    %32 = vector.broadcast %9 : vector<1x512xf32> to vector<4x512xf32>
    %33 = arith.mulf %31, %32 : vector<4x512xf32>
    %34 = tpu.concatenate %12, %15, %18, %21, %0, %24, %27, %30, %33 in 0 : vector<4x512xf32>, vector<4x512xf32>, vector<4x512xf32>, vector<4x512xf32>, vector<4x512xf32>, vector<4x512xf32>, vector<4x512xf32>, vector<4x512xf32>, vector<4x512xf32> -> vector<36x512xf32>
    %c0_3 = arith.constant 0 : index
    %c0_4 = arith.constant 0 : index
    %35 = vector.load %arg3[%c0_3, %c0_4] : memref<4x36xf32, #tpu.memory_space<vmem>>, vector<4x36xf32>
    %cst = arith.constant dense<0.000000e+00> : vector<4x512xf32>
    %36 = tpu.matmul %35, %34, %cst {dimension_numbers = #tpu.dot_dimension_numbers<[1], [0], [0], [1], [0, 0, 1, 1], [], []>} : vector<4x36xf32>, vector<36x512xf32>, vector<4x512xf32> -> vector<4x512xf32>
    %c0_5 = arith.constant 0 : index
    %c0_6 = arith.constant 0 : index
    %37 = vector.load %arg4[%c0_5, %c0_6] : memref<4x1xf32, #tpu.memory_space<vmem>>, vector<4x1xf32>
    %38 = vector.broadcast %37 : vector<4x1xf32> to vector<4x512xf32>
    %39 = arith.addf %36, %38 : vector<4x512xf32>
    %cst_7 = arith.constant 0.000000e+00 : f32
    %40 = vector.broadcast %cst_7 : f32 to vector<4x512xf32>
    %41 = arith.cmpf oge, %39, %40 : vector<4x512xf32>
    %cst_8 = arith.constant 2.000000e-01 : f32
    %42 = vector.broadcast %cst_8 : f32 to vector<4x512xf32>
    %43 = arith.mulf %42, %39 : vector<4x512xf32>
    %44 = arith.select %41, %39, %43 : vector<4x512xi1>, vector<4x512xf32>
    %c17_i32_9 = arith.constant 17 : i32
    %45 = tpu.dynamic_rotate %44 by %c17_i32_9 dim 1 : vector<4x512xf32>, i32 -> vector<4x512xf32>
    %46 = vector.broadcast %2 : vector<1x512xf32> to vector<4x512xf32>
    %47 = arith.mulf %45, %46 : vector<4x512xf32>
    %c16_i32_10 = arith.constant 16 : i32
    %48 = tpu.dynamic_rotate %44 by %c16_i32_10 dim 1 : vector<4x512xf32>, i32 -> vector<4x512xf32>
    %49 = vector.broadcast %3 : vector<1x512xf32> to vector<4x512xf32>
    %50 = arith.mulf %48, %49 : vector<4x512xf32>
    %c15_i32_11 = arith.constant 15 : i32
    %51 = tpu.dynamic_rotate %44 by %c15_i32_11 dim 1 : vector<4x512xf32>, i32 -> vector<4x512xf32>
    %52 = vector.broadcast %4 : vector<1x512xf32> to vector<4x512xf32>
    %53 = arith.mulf %51, %52 : vector<4x512xf32>
    %c1_i32_12 = arith.constant 1 : i32
    %54 = tpu.dynamic_rotate %44 by %c1_i32_12 dim 1 : vector<4x512xf32>, i32 -> vector<4x512xf32>
    %55 = vector.broadcast %5 : vector<1x512xf32> to vector<4x512xf32>
    %56 = arith.mulf %54, %55 : vector<4x512xf32>
    %c511_i32_13 = arith.constant 511 : i32
    %57 = tpu.dynamic_rotate %44 by %c511_i32_13 dim 1 : vector<4x512xf32>, i32 -> vector<4x512xf32>
    %58 = vector.broadcast %6 : vector<1x512xf32> to vector<4x512xf32>
    %59 = arith.mulf %57, %58 : vector<4x512xf32>
    %c497_i32_14 = arith.constant 497 : i32
    %60 = tpu.dynamic_rotate %44 by %c497_i32_14 dim 1 : vector<4x512xf32>, i32 -> vector<4x512xf32>
    %61 = vector.broadcast %7 : vector<1x512xf32> to vector<4x512xf32>
    %62 = arith.mulf %60, %61 : vector<4x512xf32>
    %c496_i32_15 = arith.constant 496 : i32
    %63 = tpu.dynamic_rotate %44 by %c496_i32_15 dim 1 : vector<4x512xf32>, i32 -> vector<4x512xf32>
    %64 = vector.broadcast %8 : vector<1x512xf32> to vector<4x512xf32>
    %65 = arith.mulf %63, %64 : vector<4x512xf32>
    %c495_i32_16 = arith.constant 495 : i32
    %66 = tpu.dynamic_rotate %44 by %c495_i32_16 dim 1 : vector<4x512xf32>, i32 -> vector<4x512xf32>
    %67 = vector.broadcast %9 : vector<1x512xf32> to vector<4x512xf32>
    %68 = arith.mulf %66, %67 : vector<4x512xf32>
    %69 = tpu.concatenate %47, %50, %53, %56, %44, %59, %62, %65, %68 in 0 : vector<4x512xf32>, vector<4x512xf32>, vector<4x512xf32>, vector<4x512xf32>, vector<4x512xf32>, vector<4x512xf32>, vector<4x512xf32>, vector<4x512xf32>, vector<4x512xf32> -> vector<36x512xf32>
    %70 = tpu.concatenate %34, %69 in 0 : vector<36x512xf32>, vector<36x512xf32> -> vector<72x512xf32>
    %c0_17 = arith.constant 0 : index
    %c0_18 = arith.constant 0 : index
    %71 = vector.load %arg5[%c0_17, %c0_18] : memref<4x72xf32, #tpu.memory_space<vmem>>, vector<4x72xf32>
    %cst_19 = arith.constant dense<0.000000e+00> : vector<4x512xf32>
    %72 = tpu.matmul %71, %70, %cst_19 {dimension_numbers = #tpu.dot_dimension_numbers<[1], [0], [0], [1], [0, 0, 1, 1], [], []>} : vector<4x72xf32>, vector<72x512xf32>, vector<4x512xf32> -> vector<4x512xf32>
    %c0_20 = arith.constant 0 : index
    %c0_21 = arith.constant 0 : index
    %73 = vector.load %arg6[%c0_20, %c0_21] : memref<4x1xf32, #tpu.memory_space<vmem>>, vector<4x1xf32>
    %74 = vector.broadcast %73 : vector<4x1xf32> to vector<4x512xf32>
    %75 = arith.addf %72, %74 : vector<4x512xf32>
    %cst_22 = arith.constant 0.000000e+00 : f32
    %76 = vector.broadcast %cst_22 : f32 to vector<4x512xf32>
    %77 = arith.cmpf oge, %75, %76 : vector<4x512xf32>
    %cst_23 = arith.constant 2.000000e-01 : f32
    %78 = vector.broadcast %cst_23 : f32 to vector<4x512xf32>
    %79 = arith.mulf %78, %75 : vector<4x512xf32>
    %80 = arith.select %77, %75, %79 : vector<4x512xi1>, vector<4x512xf32>
    %cst_24 = arith.constant 1.000000e+00 : f32
    %81 = vector.broadcast %cst_24 : f32 to vector<4x512xf32>
    %82 = arith.mulf %12, %81 : vector<4x512xf32>
    %cst_25 = arith.constant 1.000000e+00 : f32
    %83 = vector.broadcast %cst_25 : f32 to vector<4x512xf32>
    %84 = arith.mulf %12, %83 : vector<4x512xf32>
    %cst_26 = arith.constant 2.000000e+00 : f32
    %85 = vector.broadcast %cst_26 : f32 to vector<4x512xf32>
    %86 = arith.mulf %15, %85 : vector<4x512xf32>
    %cst_27 = arith.constant -1.000000e+00 : f32
    %87 = vector.broadcast %cst_27 : f32 to vector<4x512xf32>
    %88 = arith.mulf %18, %87 : vector<4x512xf32>
    %cst_28 = arith.constant 1.000000e+00 : f32
    %89 = vector.broadcast %cst_28 : f32 to vector<4x512xf32>
    %90 = arith.mulf %18, %89 : vector<4x512xf32>
    %cst_29 = arith.constant 2.000000e+00 : f32
    %91 = vector.broadcast %cst_29 : f32 to vector<4x512xf32>
    %92 = arith.mulf %21, %91 : vector<4x512xf32>
    %cst_30 = arith.constant -2.000000e+00 : f32
    %93 = vector.broadcast %cst_30 : f32 to vector<4x512xf32>
    %94 = arith.mulf %24, %93 : vector<4x512xf32>
    %cst_31 = arith.constant 1.000000e+00 : f32
    %95 = vector.broadcast %cst_31 : f32 to vector<4x512xf32>
    %96 = arith.mulf %27, %95 : vector<4x512xf32>
    %cst_32 = arith.constant -1.000000e+00 : f32
    %97 = vector.broadcast %cst_32 : f32 to vector<4x512xf32>
    %98 = arith.mulf %27, %97 : vector<4x512xf32>
    %cst_33 = arith.constant -2.000000e+00 : f32
    %99 = vector.broadcast %cst_33 : f32 to vector<4x512xf32>
    %100 = arith.mulf %30, %99 : vector<4x512xf32>
    %cst_34 = arith.constant -1.000000e+00 : f32
    %101 = vector.broadcast %cst_34 : f32 to vector<4x512xf32>
    %102 = arith.mulf %33, %101 : vector<4x512xf32>
    %cst_35 = arith.constant -1.000000e+00 : f32
    %103 = vector.broadcast %cst_35 : f32 to vector<4x512xf32>
    %104 = arith.mulf %33, %103 : vector<4x512xf32>
    %105 = arith.addf %82, %88 : vector<4x512xf32>
    %106 = arith.addf %92, %94 : vector<4x512xf32>
    %107 = arith.addf %96, %102 : vector<4x512xf32>
    %108 = arith.addf %105, %106 : vector<4x512xf32>
    %109 = arith.addf %108, %107 : vector<4x512xf32>
    %110 = math.absf %109 : vector<4x512xf32>
    %111 = arith.addf %84, %86 : vector<4x512xf32>
    %112 = arith.addf %90, %98 : vector<4x512xf32>
    %113 = arith.addf %100, %104 : vector<4x512xf32>
    %114 = arith.addf %111, %112 : vector<4x512xf32>
    %115 = arith.addf %114, %113 : vector<4x512xf32>
    %116 = math.absf %115 : vector<4x512xf32>
    %117 = arith.addf %110, %116 : vector<4x512xf32>
    %118 = tpu.concatenate %0, %44, %80, %117 in 0 : vector<4x512xf32>, vector<4x512xf32>, vector<4x512xf32>, vector<4x512xf32> -> vector<16x512xf32>
    %c0_36 = arith.constant 0 : index
    %c0_37 = arith.constant 0 : index
    %119 = vector.load %arg7[%c0_36, %c0_37] : memref<8x16xf32, #tpu.memory_space<vmem>>, vector<8x16xf32>
    %cst_38 = arith.constant dense<0.000000e+00> : vector<8x512xf32>
    %120 = tpu.matmul %119, %118, %cst_38 {dimension_numbers = #tpu.dot_dimension_numbers<[1], [0], [0], [1], [0, 0, 1, 1], [], []>} : vector<8x16xf32>, vector<16x512xf32>, vector<8x512xf32> -> vector<8x512xf32>
    %c0_39 = arith.constant 0 : index
    %c0_40 = arith.constant 0 : index
    %121 = vector.load %arg8[%c0_39, %c0_40] : memref<8x1xf32, #tpu.memory_space<vmem>>, vector<8x1xf32>
    %122 = vector.broadcast %121 : vector<8x1xf32> to vector<8x512xf32>
    %123 = arith.addf %120, %122 : vector<8x512xf32>
    %cst_41 = arith.constant 0.000000e+00 : f32
    %124 = vector.broadcast %cst_41 : f32 to vector<8x512xf32>
    %125 = arith.cmpf oge, %123, %124 : vector<8x512xf32>
    %cst_42 = arith.constant 1.000000e-01 : f32
    %126 = vector.broadcast %cst_42 : f32 to vector<8x512xf32>
    %127 = arith.mulf %126, %123 : vector<8x512xf32>
    %128 = arith.select %125, %123, %127 : vector<8x512xi1>, vector<8x512xf32>
    %c0_43 = arith.constant 0 : index
    %c0_44 = arith.constant 0 : index
    %129 = vector.load %arg9[%c0_43, %c0_44] : memref<8x512xf32, #tpu.memory_space<vmem>>, vector<8x512xf32>
    tpu.vector_store %arg9[%c0_43, %c0_44], %128 {strides = array<i32>} : memref<8x512xf32, #tpu.memory_space<vmem>>, vector<8x512xf32>,
    return
  }
  func.func @transform_0(%arg0: i32) -> (i32, i32) {
    %c0_i32 = arith.constant 0 : i32
    %c0_i32_0 = arith.constant 0 : i32
    return %c0_i32, %arg0 : i32, i32
  }
  func.func @transform_1(%arg0: i32) -> (i32, i32) {
    %c0_i32 = arith.constant 0 : i32
    %c0_i32_0 = arith.constant 0 : i32
    %c0_i32_1 = arith.constant 0 : i32
    return %c0_i32, %c0_i32_0 : i32, i32
  }
  func.func @transform_2(%arg0: i32) -> (i32, i32) {
    %c0_i32 = arith.constant 0 : i32
    %c0_i32_0 = arith.constant 0 : i32
    %c0_i32_1 = arith.constant 0 : i32
    return %c0_i32, %c0_i32_0 : i32, i32
  }
  func.func @transform_3(%arg0: i32) -> (i32, i32) {
    %c0_i32 = arith.constant 0 : i32
    %c0_i32_0 = arith.constant 0 : i32
    %c0_i32_1 = arith.constant 0 : i32
    return %c0_i32, %c0_i32_0 : i32, i32
  }
  func.func @transform_4(%arg0: i32) -> (i32, i32) {
    %c0_i32 = arith.constant 0 : i32
    %c0_i32_0 = arith.constant 0 : i32
    %c0_i32_1 = arith.constant 0 : i32
    return %c0_i32, %c0_i32_0 : i32, i32
  }
  func.func @transform_5(%arg0: i32) -> (i32, i32) {
    %c0_i32 = arith.constant 0 : i32
    %c0_i32_0 = arith.constant 0 : i32
    %c0_i32_1 = arith.constant 0 : i32
    return %c0_i32, %c0_i32_0 : i32, i32
  }
  func.func @transform_6(%arg0: i32) -> (i32, i32) {
    %c0_i32 = arith.constant 0 : i32
    %c0_i32_0 = arith.constant 0 : i32
    %c0_i32_1 = arith.constant 0 : i32
    return %c0_i32, %c0_i32_0 : i32, i32
  }
  func.func @transform_7(%arg0: i32) -> (i32, i32) {
    %c0_i32 = arith.constant 0 : i32
    %c0_i32_0 = arith.constant 0 : i32
    %c0_i32_1 = arith.constant 0 : i32
    return %c0_i32, %c0_i32_0 : i32, i32
  }
  func.func @transform_8(%arg0: i32) -> (i32, i32) {
    %c0_i32 = arith.constant 0 : i32
    %c0_i32_0 = arith.constant 0 : i32
    return %c0_i32, %arg0 : i32, i32
  }
}

</mosaic_0001>

<bundles_post_ra>
// kernel: tpu_custom_call.1
= control target key start
LH: loop header
LB: loop body
LE: loop exit
PB: predicated region body
PF: predicated region fallthrough
CT: control target
= control target key end

     0   :  { %13 = vsyncpa [#allocation3], 0  ;;  %s2968_s0 = inlined_call_operand.hbm [shape: f32[4,1024], index: 0, kind: input, shape index: {}]   ;;  %s2969_s1 = inlined_call_operand.hbm [shape: f32[9,512], index: 1, kind: input, shape index: {}]   ;;  %s2970_s2 = inlined_call_operand.vmem [shape: f32[4,36], index: 2, kind: input, shape index: {}]   ;;  %s2971_s3 = inlined_call_operand.vmem [shape: f32[4,1], index: 3, kind: input, shape index: {}]   ;;  %s2972_s4 = inlined_call_operand.vmem [shape: f32[4,72], index: 4, kind: input, shape index: {}]   ;;  %s2973_s5 = inlined_call_operand.vmem [shape: f32[4,1], index: 5, kind: input, shape index: {}]   ;;  %s2974_s6 = inlined_call_operand.vmem [shape: f32[8,16], index: 6, kind: input, shape index: {}]   ;;  %s2975_s7 = inlined_call_operand.vmem [shape: f32[8,1], index: 7, kind: input, shape index: {}]   ;;  %s2976_s8 = inlined_call_operand.hbm [shape: f32[8,1024], index: 8, kind: output, shape index: {}]  }
   0x1   :  { %15 = vsyncpa [#allocation3 + $0x1], 0 }
   0x2   :  { %16 = vsyncpa [#allocation6], 0 }
   0x3   :  { %17 = vsyncpa [#allocation4], 0 }
   0x4   :  { %19 = vsyncpa [#allocation4 + $0x1], 0  ;;  %s2029_s27 = smov 0   ;;  %s2031_s28 = smov 0  }
   0x5   :  { %s2033_s29 = smov 0   ;;  %s2035_s30 = smov 0  }
   0x6 LB: > { %s2050_s9 = sadd.s32 4294967295, %s1967_s30   ;;  %s1676_s10 = sadd.s32 4294967294, %s1967_s30   ;;  %s1967_s30 = sphi %s2035_s30, %s3044_s30   ;;  %s1963_s29 = sphi %s2033_s29, %s3047_s29   ;;  %s1959_s28 = sphi %s2031_s28, %s3046_s28   ;;  %s1955_s27 = sphi %s2029_s27, %s3045_s27  }
   0x7   : > { %p45_p0 = scmp.ne.s32.totalorder %s1959_s28, %s1955_s27  ;;  %p2977_p1 = scmp.eq.s32.totalorder %s2050_s9, 0 }
   0x8   : > { %p222_p3 = scmp.eq.s32.totalorder %s1676_s10, 1  ;;  %p1677_p5 = scmp.ge.s32.totalorder %s1967_s30, 1 }
   0x9   : > { %p2059_p4 = por %p2977_p1, %p45_p0  ;;  %p229_p7 = scmp.lt.s32.totalorder %s1967_s30, 3 }
   0xa   : > { %p2064_p6 = por %p222_p3, %p45_p0  ;;  %s1969_s14 = smov [#allocation5]  }
   0xb   : > { %s2999_s11 = scalar_select %p2059_p4, 1, 0 }
   0xc   : > { %s3000_s12 = scalar_select %p2064_p6, 1, 0 }
   0xd   : > { %p2069_p8 = pnand %p1677_p5, %p229_p7  ;;  %s241_s15 = sshll.u32 %s1969_s14, 4  ;;  %s2073_s15 = int_to_ptr.vmem [resolvable:$true] %s241_s15 }
   0xe   : > { %s2085_s17 = sadd.s32 1, %s1967_s30   ;;  %s32_s18 = sadd.s32 1, %s1963_s29 }
   0xf   : > { %s3001_s13 = scalar_select %p2069_p8, 1, 0 }
  0x10   : > { %p1772_p9 = pneg %p2069_p8  ;;  %3003 = sst [smem:[#allocation11_spill]] %s2085_s17 }
  0x11   : > { %s29_s19 = ssub.s32 %s1967_s30, %s2085_s17  ;;  %s1839_s22 = scalar_lea.hbm %s2969_s1, 1024 }
  0x12   : > { %p2080_p11 = pnand %p1772_p9, %p2977_p1  ;;  %p1840_p12 = scmp.ne.s32.totalorder %s2969_s1, %s1839_s22 }
  0x13   : > { %p1846_p5 = scmp.lt.u32.totalorder %s1839_s22, %s2969_s1 }
  0x14   : > { %p1841_p13 = pneg %p2080_p11 }
  0x16   : > { %p1842_p0 = pnand %p1841_p13, %p1840_p12 }
  0x18   : > { %p1843_p3 = pneg %p1842_p0 }
  0x1a   : > { %p1848_p7 = pnand %p1846_p5, %p1843_p3 }
  0x1c   : > { %1851 = shalt.err (!%p1848_p7)
}
  0x1d   : > { %s1852_s10 = scalar_lea.vmem %s2073_s15, 1024  ;;  %p1860_p2 = scmp.lt.s32.totalorder %s2073_s15, %s2073_s15 }
  0x1e   : > { %p1853_p9 = scmp.ne.s32.totalorder %s2073_s15, %s1852_s10  ;;  %p1861_p6 = scmp.lt.s32.totalorder %s1852_s10, %s1852_s10 }
  0x20   : > { %p1855_p10 = pnand %p1853_p9, %p1841_p13  ;;  %p1862_p4 = por %p1861_p6, %p1860_p2 }
  0x22   : > { %p1856_p1 = pneg %p1855_p10 }
  0x24   : > { %p1863_p8 = pnand %p1862_p4, %p1856_p1 }
  0x26   : > { %1866 = shalt.err (!%p1863_p8)
}
  0x27   : > { %s1970_s14 = smov 512   ;;  %s1971_s20 = smov 32  }
  0x28   : > { %1775 = dma.hbm_to_vmem [thread:$0]  (!%p2080_p11), %s2969_s1, 1024, %s2073_s15, [#allocation6], %s1970_s14, %s1970_s14, %s1971_s20  }
  0x29   : > { %p30_p2 = scmp.eq.s32.totalorder %s29_s19, 0  ;;  %p39_p1 = scmp.ne.s32.totalorder %s1963_s29, %s1959_s28 }
  0x2a   : > { %p40_p4 = scmp.eq.s32.totalorder %s1967_s30, 0  ;;  %p1785_p6 = scmp.lt.s32.totalorder %s1967_s30, 2 }
  0x2b   : > { %s2116_s23 = scalar_select %p30_p2, %s1963_s29, %s32_s18  }
  0x2c   : > { %p41_p8 = por %p40_p4, %p39_p1  ;;  %p3004_p10 = scmp.eq.s32.totalorder %s2050_s9, 1 }
  0x2d   : > { %s273_s25 = sand.u32 1, %s1963_s29   ;;  %s1706_s26 = sshll.u32 %s1967_s30, 8 }
  0x2e   : > { %p2120_p12 = por %p3004_p10, %p39_p1  ;;  %s1680_s10 = sshll.u32 %s273_s25, 4 }
  0x2f   : > { %s2129_s21 = scalar_lea.hbm %s2968_s0, %s1706_s26  ;;  %s277_s15 = scalar_lea.vmem [#allocation2], %s1680_s10 }
  0x30   : > { %s285_s18 = sshll.u32 %s277_s15, 4  ;;  %p2131_p11 = pnand %p1785_p6, %p41_p8  ;;  %s2135_s18 = int_to_ptr.vmem [resolvable:$true] %s285_s18 }
  0x31   : > { %s274_s14 = scalar_lea.sflag [#allocation3], %s273_s25  ;;  %s1867_s20 = scalar_lea.hbm %s2129_s21, 256 }
  0x32   : > { %p1868_p13 = scmp.ne.s32.totalorder %s2129_s21, %s1867_s20  ;;  %p1869_p0 = pneg %p2131_p11 }
  0x33   : > { %s1872_s26 = scalar_lea.hbm %s2968_s0, 512  ;;  %p1873_p7 = scmp.lt.u32.totalorder %s2129_s21, %s2968_s0 }
  0x34   : > { %p1870_p3 = pnand %p1869_p0, %p1868_p13  ;;  %p1874_p9 = scmp.lt.u32.totalorder %s1872_s26, %s1867_s20 }
  0x35   : > { %p1876_p1 = scmp.lt.u32.totalorder %s1867_s20, %s2129_s21 }
  0x36   : > { %p1871_p5 = pneg %p1870_p3  ;;  %p1875_p2 = por %p1874_p9, %p1873_p7 }
  0x38   : > { %p1877_p4 = por %p1876_p1, %p1875_p2 }
  0x3a   : > { %p1878_p6 = pnand %p1877_p4, %p1871_p5 }
  0x3c   : > { %1881 = shalt.err (!%p1878_p6)
}
  0x3d   : > { %s1882_s25 = scalar_lea.vmem %s2135_s18, 256  ;;  %s1972_s15 = smov [#allocation2]  }
  0x3e   : > { %p1883_p8 = scmp.ne.s32.totalorder %s2135_s18, %s1882_s25  ;;  %s1887_s17 = sshll.u32 %s1972_s15, 4  ;;  %s1888_s17 = int_to_ptr.vmem [resolvable:$false] %s1887_s17 }
  0x3f   : > { %s1889_s22 = scalar_lea.vmem %s1888_s17, 512  ;;  %p1890_p3 = scmp.lt.s32.totalorder %s2135_s18, %s1888_s17 }
  0x40   : > { %p1885_p10 = pnand %p1883_p8, %p1869_p0  ;;  %p1891_p7 = scmp.lt.s32.totalorder %s1889_s22, %s1882_s25 }
  0x42   : > { %p1886_p13 = pneg %p1885_p10  ;;  %p1892_p9 = por %p1891_p7, %p1890_p3 }
  0x44   : > { %p1893_p2 = pnand %p1892_p9, %p1886_p13 }
  0x46   : > { %1896 = shalt.err (!%p1893_p2)
}
  0x47   : > { %1779 = dma.hbm_to_vmem [thread:$0]  (!%p2131_p11), %s2129_s21, 256, %s2135_s18, %s274_s14  }
  0x48   : > { %p3007_p5 = scmp.ne.s32.totalorder %s3001_s13, 0 }
  0x4a   : > { %294 = sbr.rel (%p3007_p5) target bundleno = 1131 (0x46b), region = 52 }
  0x51   : > { %s2165_s20 = sand.u32 1, %s1959_s28   ;;  %p3008_p0 = scmp.ne.s32.totalorder %s2999_s11, 0 }
  0x52   : > { %s1684_s26 = sshll.u32 %s2165_s20, 4  ;;  %s297_s10 = scalar_lea.sflag [#allocation3], %s2165_s20 }
  0x53   : > { %s2169_s16 = scalar_lea.vmem [#allocation2], %s1684_s26 }
  0x54   : > { %1942 = dma.done.wait (%p3008_p0), %s297_s10, 256  }
  0x55   : > { %1944 = vsyncadd (%p3008_p0), %s297_s10, 4294967040  ;;  %p3009_p11 = scmp.eq.s32.totalorder %s2050_s9, 0 }
  0x57   : > { %1946 = dma.done.wait (%p3009_p11), [#allocation6], 1024   ;;  %p3010_p1 = pmov %p3009_p11 }
  0x58   : > { %v2180_v0 = vld [vmem:[%s2169_s16 + $0x8] sm:$0xff]  ;;  %v2183_v1 = vld [vmem:[%s2169_s16] sm:$0xff]  ;;  %s1973_s13 = smov 16   ;;  %s1974_s11 = smov 1   ;;  %v2982_v4 = vmov 0.0   ;;  %v1982_v5 = vmov 0   ;;  %v363_v7 = vlaneseq }
  0x59   : > { %1948 = vsyncadd (%p3010_p1), [#allocation6], 4294966272  ;;  %394 = vrot.lane.b32.xlu1 %v2180_v0, %s1973_s13  ;;  %390 = vrot.lane.b32.xlu0 %v2183_v1, %s1973_s13  ;;  %v2191_v2 = vcombine.high %v2180_v0, %v2180_v0  ;;  %v2199_v3 = vcombine.high %v2183_v1, %v2183_v1  ;;  %s1975_s21 = smov 17   ;;  %s1976_s18 = smov 15   ;;  %v687_v6 = vld [vmem:[%s2971_s3] sm:$0xf] }
  0x5a   : > { %s1977_s19 = smov 127   ;;  %s1978_s14 = smov 112   ;;  %773 = vmatprep.mubr.f32.mxu0 %v2982_v4  ;;  %844 = vmatprep.mubr.f32.mxu1 %v2982_v4  ;;  %v2262_v10 = vshrl.u32 %v363_v7, 7  ;;  %v2264_v13 = vand.u32 127, %v363_v7  ;;  %v2267_v15 = vld [vmem:[#allocation5 + $0x8] sm:$0xff]  ;;  %v2269_v16 = vld [vmem:[#allocation5] sm:$0xff] }
  0x5b   : > { %3011 = vst [vmem:[#allocation12_spill] sm:$0xff] %v2191_v2  ;;  %3012 = vst [vmem:[#allocation13_spill] sm:$0xff] %v2199_v3  ;;  %s1979_s25 = smov 113   ;;  %s1981_s15 = smov 111   ;;  %1833 = vset.pattern.permute.xlu0 %v1982_v5  ;;  %1834 = vset.pattern.permute.xlu1 %v1982_v5  ;;  %v2271_v19 = vld [vmem:[#allocation5 + $0x18] sm:$0xff]  ;;  %v2275_v21 = vld [vmem:[#allocation5 + $0x10] sm:$0xff] }
  0x5c   : > { %v405_v14 = vsub.s32 1, %v2262_v10  ;;  %vm398_vm0 = vcmp.lt.s32.totalorder %v2264_v13, 16  ;;  %v471_v20 = vsub.s32 3, %v2262_v10  ;;  %v372_v23 = vsub.s32 0, %v2262_v10  ;;  %s1686_s17 = sshll.u32 %s2165_s20, 5  ;;  %s1707_s22 = sshll.u32 %s2050_s9, 9 }
  0x5d   : > { %396 = vrot.lane.b32.xlu1 %v2191_v2, %s1973_s13  ;;  %456 = vrot.lane.b32.xlu0 %v2183_v1, %s1974_s11  ;;  %vm464_vm1 = vcmp.lt.s32.totalorder %v2264_v13, 1  ;;  %v438_v33 = vsub.s32 2, %v2262_v10  ;;  %vm365_vm2 = vcmp.lt.s32.totalorder %v2264_v13, 17  ;;  %vm431_vm3 = vcmp.lt.s32.totalorder %v2264_v13, 15  ;;  %s1582_s9 = scalar_lea.sflag [#allocation4], %s2165_s20 }
  0x5e   : > { %v2278_v22 = vrot.slane %v2267_v15, %v405_v14  ;;  %v2282_v24 = vrot.slane %v2269_v16, %v405_v14  ;;  %v2287_v26 = vrot.slane %v2271_v19, %v405_v14  ;;  %v2295_v31 = vrot.slane %v2267_v15, %v471_v20 }
  0x5f   : > { %v2298_v32 = vrot.slane %v2275_v21, %v405_v14  ;;  %v2305_v35 = vrot.slane %v2269_v16, %v471_v20  ;;  %v2309_v36 = vrot.slane %v2267_v15, %v372_v23  ;;  %v2317_v39 = vrot.slane %v2275_v21, %v471_v20 }
  0x60   : > { %v2320_v40 = vrot.slane %v2271_v19, %v471_v20  ;;  %v2326_v44 = vrot.slane %v2269_v16, %v372_v23  ;;  %v2329_v45 = vrot.slane %v2275_v21, %v372_v23  ;;  %v2332_v46 = vrot.slane %v2271_v19, %v372_v23 }
  0x61   : > { %458 = vrot.lane.b32.xlu1 %v2199_v3, %s1974_s11  ;;  %392 = vrot.lane.b32.xlu0 %v2199_v3, %s1973_s13  ;;  %v2340_v49 = vrot.slane %v2267_v15, %v438_v33  ;;  %vm669_vm4 = vcmask 1043456   ;;  %v2348_v53 = vrot.slane %v2269_v16, %v438_v33  ;;  %v2352_v55 = vrot.slane %v2275_v21, %v438_v33 }
  0x62   : > { %3013 = vst [vmem:[#allocation14_spill] sm:$0xff] %v2320_v40  ;;  %3014 = vst [vmem:[#allocation15_spill] sm:$0xff] %v2329_v45  ;;  %v2355_v56 = vrot.slane %v2271_v19, %v438_v33  ;;  %v504_v57 = vsub.s32 5, %v2262_v10  ;;  %vm497_vm5 = vcmp.lt.s32.totalorder %v2264_v13, 127  ;;  %vm563_vm6 = vcmp.lt.s32.totalorder %v2264_v13, 112 }
  0x63   : > { %3015 = vst [vmem:[#allocation16_spill] sm:$0xff] %v2340_v49  ;;  %3016 = vst [vmem:[#allocation17_spill] sm:$0xff] %v2348_v53  ;;  %vm530_vm7 = vcmp.lt.s32.totalorder %v2264_v13, 113  ;;  %vm596_vm8 = vcmp.lt.s32.totalorder %v2264_v13, 111  ;;  %vm693_vm9 = vcmask 293888   ;;  %vm1142_vm14 = vcmask 588800  }
  0x64   : > { %3017 = vst [vmem:[#allocation18_spill] sm:$0xff] %v2352_v55  ;;  %3018 = vst [vmem:[#allocation19_spill] sm:$0xff] %v2355_v56  ;;  %v2383_v23 = vrot.slane %v2269_v16, %v504_v57 }
  0x65   : > { %462 = vrot.lane.b32.xlu1 %v2191_v2, %s1974_s11  ;;  %460 = vrot.lane.b32.xlu0 %v2180_v0, %s1974_s11 }
  0x69   : > { %357 = vrot.lane.b32.xlu1 %v2199_v3, %s1975_s21  ;;  %355 = vrot.lane.b32.xlu0 %v2183_v1, %s1975_s21 }
  0x6d   : > { %361 = vrot.lane.b32.xlu1 %v2191_v2, %s1975_s21  ;;  %359 = vrot.lane.b32.xlu0 %v2180_v0, %s1975_s21 }
  0x71   : > { %425 = vrot.lane.b32.xlu1 %v2199_v3, %s1976_s18  ;;  %423 = vrot.lane.b32.xlu0 %v2183_v1, %s1976_s18 }
  0x75   : > { %429 = vrot.lane.b32.xlu1 %v2191_v2, %s1976_s18  ;;  %427 = vrot.lane.b32.xlu0 %v2180_v0, %s1976_s18 }
  0x79   : > { %491 = vrot.lane.b32.xlu1 %v2199_v3, %s1977_s19  ;;  %489 = vrot.lane.b32.xlu0 %v2183_v1, %s1977_s19 }
  0x7d   : > { %495 = vrot.lane.b32.xlu1 %v2191_v2, %s1977_s19  ;;  %493 = vrot.lane.b32.xlu0 %v2180_v0, %s1977_s19 }
  0x81   : > { %557 = vrot.lane.b32.xlu1 %v2199_v3, %s1978_s14  ;;  %555 = vrot.lane.b32.xlu0 %v2183_v1, %s1978_s14 }
  0x85   : > { %561 = vrot.lane.b32.xlu1 %v2191_v2, %s1978_s14  ;;  %559 = vrot.lane.b32.xlu0 %v2180_v0, %s1978_s14 }
  0x89   : > { %524 = vrot.lane.b32.xlu1 %v2199_v3, %s1979_s25  ;;  %522 = vrot.lane.b32.xlu0 %v2183_v1, %s1979_s25 }
  0x8d   : > { %528 = vrot.lane.b32.xlu1 %v2191_v2, %s1979_s25  ;;  %526 = vrot.lane.b32.xlu0 %v2180_v0, %s1979_s25 }
  0x91   : > { %590 = vrot.lane.b32.xlu1 %v2199_v3, %s1981_s15  ;;  %588 = vrot.lane.b32.xlu0 %v2183_v1, %s1981_s15 }
  0x95   : > { %594 = vrot.lane.b32.xlu1 %v2191_v2, %s1981_s15  ;;  %592 = vrot.lane.b32.xlu0 %v2180_v0, %s1981_s15 }
  0x99   : > { %690 = vperm.xlu0 %1833, %v687_v6  }
  0xcb   : > { %v395_v8 = vpop.permute.xlu1 %394  ;;  %v391_v9 = vpop.permute.xlu0 %390 }
  0xcf   : > { %v397_v11 = vpop.permute.xlu1 %396  ;;  %v457_v12 = vpop.permute.xlu0 %456 }
  0xd0   : > { %v402_v27 = vsel %vm398_vm0, %v397_v11, %v391_v9  ;;  %v399_v30 = vsel %vm398_vm0, %v395_v8, %v397_v11 }
  0xd1   : > { %v2312_v37 = vmul.f32 %v2282_v24, %v402_v27  ;;  %v2323_v41 = vmul.f32 %v2287_v26, %v399_v30 }
  0xd3   : > { %v459_v17 = vpop.permute.xlu1 %458  ;;  %v393_v18 = vpop.permute.xlu0 %392  ;;  %v1300_v54 = vmul.f32 2.0, %v2312_v37  ;;  %v1303_v58 = vmul.f32 2.0, %v2323_v41 }
  0xd4   : > { %v401_v25 = vsel %vm398_vm0, %v391_v9, %v393_v18  ;;  %v400_v38 = vsel %vm398_vm0, %v393_v18, %v395_v8  ;;  %v467_v47 = vsel %vm464_vm1, %v457_v12, %v459_v17 }
  0xd5   : > { %v2302_v34 = vmul.f32 %v2278_v22, %v401_v25  ;;  %v2343_v50 = vmul.f32 %v2298_v32, %v400_v38  ;;  %v2360_v59 = vmul.f32 %v2295_v31, %v467_v47  ;;  %v625_v47 = vrot.slane %v2312_v37, 4 }
  0xd7   : > { %v463_v28 = vpop.permute.xlu1 %462  ;;  %v461_v29 = vpop.permute.xlu0 %460  ;;  %v1301_v51 = vmul.f32 2.0, %v2302_v34  ;;  %v1302_v9 = vmul.f32 2.0, %v2343_v50 }
  0xd8   : > { %v468_v60 = vsel %vm464_vm1, %v463_v28, %v457_v12  ;;  %v465_v5 = vsel %vm464_vm1, %v461_v29, %v463_v28  ;;  %v466_v20 = vsel %vm464_vm1, %v459_v17, %v461_v29  ;;  %v2397_v17 = vrot.slane %v2271_v19, %v504_v57 }
  0xd9   : > { %v485_v18 = vmul.f32 %v2305_v35, %v468_v60  ;;  %v2386_v25 = vmul.f32 %v2320_v40, %v465_v5  ;;  %v2400_v29 = vrot.slane %v2267_v15, %v504_v57  ;;  %v627_v60 = vrot.slane %v2343_v50, 4 }
  0xdb   : > { %v358_v42 = vpop.permute.xlu1 %357  ;;  %v356_v43 = vpop.permute.xlu0 %355  ;;  %v640_v5 = vrot.slane %v2386_v25, 4  ;;  %v1308_v40 = vmul.f32 2.0, %v485_v18 }
  0xdc   : > { %v368_v48 = vsel %vm365_vm2, %v356_v43, %v358_v42 }
  0xdd   : > { %v387_v52 = vmul.f32 %v2309_v36, %v368_v48  ;;  %v638_v48 = vrot.slane %v2360_v59, 4 }
  0xdf   : > { %v2364_v61 = vadd.f32 %v1301_v51, %v387_v52  ;;  %v362_v62 = vpop.permute.xlu1 %361  ;;  %v360_v63 = vpop.permute.xlu0 %359  ;;  %v626_v51 = vrot.slane %v2302_v34, 4 }
  0xe0   : > { %v369_v6 = vsel %vm365_vm2, %v362_v62, %v356_v43  ;;  %v366_v7 = vsel %vm365_vm2, %v360_v63, %v362_v62  ;;  %v367_v8 = vsel %vm365_vm2, %v358_v42, %v360_v63  ;;  %v2403_v43 = vrot.slane %v2275_v21, %v504_v57 }
  0xe1   : > { %v386_v11 = vmul.f32 %v2326_v44, %v369_v6  ;;  %v388_v12 = vmul.f32 %v2329_v45, %v367_v8  ;;  %v389_v14 = vmul.f32 %v2332_v46, %v366_v7  ;;  %v637_v62 = vrot.slane %v485_v18, 4 }
  0xe2   : > { %v487_v63 = vmul.f32 %v2317_v39, %v466_v20  ;;  %v671_v7 = vsel %vm669_vm4, %v387_v52, %v626_v51 }
  0xe3   : > { %v2388_v27 = vadd.f32 %v1300_v54, %v386_v11  ;;  %v2390_v28 = vadd.f32 %v1302_v9, %v388_v12  ;;  %v2392_v30 = vadd.f32 %v1303_v58, %v389_v14  ;;  %v426_v33 = vpop.permute.xlu1 %425  ;;  %v424_v38 = vpop.permute.xlu0 %423  ;;  %v628_v58 = vrot.slane %v2323_v41, 4 }
  0xe4   : > { %v434_v42 = vsel %vm431_vm3, %v424_v38, %v426_v33  ;;  %v639_v4 = vrot.slane %v487_v63, 4 }
  0xe5   : > { %v2409_v54 = vmul.f32 %v2340_v49, %v434_v42 }
  0xe7   : > { %v1305_v57 = vmul.f32 -1.0, %v2409_v54  ;;  %v430_v6 = vpop.permute.xlu1 %429  ;;  %v428_v37 = vpop.permute.xlu0 %427  ;;  %v675_v34 = vsel %vm669_vm4, %v2409_v54, %v638_v48 }
  0xe8   : > { %v435_v8 = vsel %vm431_vm3, %v430_v6, %v424_v38  ;;  %v432_v41 = vsel %vm431_vm3, %v428_v37, %v430_v6  ;;  %v433_v50 = vsel %vm431_vm3, %v426_v33, %v428_v37  ;;  %v2425_v9 = vpack.c.bf16 %v675_v34, %v671_v7 }
  0xe9   : > { %v1329_v20 = vadd.f32 %v1305_v57, %v387_v52  ;;  %v2428_v42 = vmul.f32 %v2348_v53, %v435_v8  ;;  %v2431_v51 = vmul.f32 %v2352_v55, %v433_v50  ;;  %v2434_v48 = vmul.f32 %v2355_v56, %v432_v41 }
  0xea   : > { %1709 = vmatprep.subr.bf16.mxu0 %v2425_v9  ;;  %v670_v38 = vsel %vm669_vm4, %v386_v11, %v625_v47  ;;  %v673_v6 = vsel %vm669_vm4, %v389_v14, %v628_v58  ;;  %v672_v33 = vsel %vm669_vm4, %v388_v12, %v627_v60 }
  0xeb   : > { %v1304_v52 = vmul.f32 -1.0, %v2428_v42  ;;  %v1306_v57 = vmul.f32 -1.0, %v2431_v51  ;;  %v1307_v37 = vmul.f32 -1.0, %v2434_v48  ;;  %v492_v7 = vpop.permute.xlu1 %491  ;;  %v490_v34 = vpop.permute.xlu0 %489  ;;  %v674_v8 = vsel %vm669_vm4, %v2428_v42, %v637_v62 }
  0xec   : > { %v500_v41 = vsel %vm497_vm5, %v490_v34, %v492_v7  ;;  %v2447_v50 = vpack.c.bf16 %v674_v8, %v670_v38  ;;  %v677_v47 = vsel %vm669_vm4, %v2434_v48, %v640_v5  ;;  %v676_v58 = vsel %vm669_vm4, %v2431_v51, %v639_v4 }
  0xed   : > { %v1328_v60 = vadd.f32 %v1304_v52, %v386_v11  ;;  %v1330_v56 = vadd.f32 %v1306_v57, %v388_v12  ;;  %v1331_v53 = vadd.f32 %v1307_v37, %v389_v14  ;;  %v518_v55 = vmul.f32 %v2383_v23, %v500_v41 }
  0xee   : > { %1711 = vmatpush1.bf16.msra.mxu0 %v2447_v50  ;;  %v2455_v49 = vpack.c.bf16 %v677_v47, %v673_v6  ;;  %v2457_v62 = vpack.c.bf16 %v676_v58, %v672_v33  ;;  %v1311_v33 = vmul.f32 2.0, %v2386_v25 }
  0xef   : > { %v1312_v38 = vmul.f32 -2.0, %v518_v55  ;;  %v496_v8 = vpop.permute.xlu1 %495  ;;  %v494_v45 = vpop.permute.xlu0 %493 }
  0xf0   : > { %1717 = vmatprep.subr.bf16.mxu1 %v2455_v49  ;;  %v501_v4 = vsel %vm497_vm5, %v496_v8, %v490_v34  ;;  %v498_v11 = vsel %vm497_vm5, %v494_v45, %v496_v8  ;;  %v499_v12 = vsel %vm497_vm5, %v492_v7, %v494_v45  ;;  %v570_v34 = vsub.s32 7, %v2262_v10 }
  0xf1   : > { %v1332_v14 = vadd.f32 %v1312_v38, %v1308_v40  ;;  %v521_v5 = vmul.f32 %v2397_v17, %v501_v4  ;;  %1719 = vmatpush1.bf16.msra.mxu1 %v2457_v62  ;;  %v519_v18 = vmul.f32 %v2400_v29, %v499_v12  ;;  %v520_v6 = vmul.f32 %v2403_v43, %v498_v11 }
  0xf2   : > { %v1309_v45 = vmul.f32 2.0, %v2360_v59  ;;  %v1310_v40 = vmul.f32 2.0, %v487_v63  ;;  %v537_v38 = vsub.s32 6, %v2262_v10  ;;  %v649_v10 = vrot.slane %v518_v55, 4 }
  0xf3   : > { %v2471_v52 = vadd.f32 %v1332_v14, %v1328_v60  ;;  %v1315_v57 = vmul.f32 -2.0, %v521_v5  ;;  %v558_v37 = vpop.permute.xlu1 %557  ;;  %v556_v41 = vpop.permute.xlu0 %555  ;;  %v1313_v7 = vmul.f32 -2.0, %v519_v18  ;;  %v1314_v47 = vmul.f32 -2.0, %v520_v6 }
  0xf4   : > { %v2480_v60 = vrot.slane %v2269_v16, %v570_v34  ;;  %v566_v63 = vsel %vm563_vm6, %v556_v41, %v558_v37 }
  0xf5   : > { %v1335_v58 = vadd.f32 %v1315_v57, %v1311_v33  ;;  %v1333_v8 = vadd.f32 %v1313_v7, %v1309_v45  ;;  %v1334_v4 = vadd.f32 %v1314_v47, %v1310_v40  ;;  %v2489_v33 = vrot.slane %v2271_v19, %v570_v34 }
  0xf6   : > { %v2492_v57 = vrot.slane %v2267_v15, %v570_v34  ;;  %v652_v45 = vrot.slane %v521_v5, 4  ;;  %v651_v40 = vrot.slane %v520_v6, 4  ;;  %v584_v7 = vmul.f32 %v2480_v60, %v566_v63 }
  0xf7   : > { %v2477_v25 = vadd.f32 %v1335_v58, %v1331_v53  ;;  %v562_v11 = vpop.permute.xlu1 %561  ;;  %v560_v12 = vpop.permute.xlu0 %559  ;;  %v2482_v14 = vadd.f32 %v1333_v8, %v1329_v20  ;;  %v2484_v59 = vadd.f32 %v1334_v4, %v1330_v56  ;;  %3019 = vst [vmem:[#allocation20_spill] sm:$0xff] %v2489_v33  ;;  %v2496_v53 = vrot.slane %v2269_v16, %v537_v38 }
  0xf8   : > { %3020 = vst [vmem:[#allocation21_spill] sm:$0xff] %v2492_v57  ;;  %v650_v20 = vrot.slane %v519_v18, 4  ;;  %v2499_v56 = vrot.slane %v2275_v21, %v570_v34  ;;  %v567_v47 = vsel %vm563_vm6, %v562_v11, %v556_v41  ;;  %v564_v55 = vsel %vm563_vm6, %v560_v12, %v562_v11 }
  0xf9   : > { %3021 = vst [vmem:[#allocation22_spill] sm:$0xff] %v2496_v53  ;;  %v565_v58 = vsel %vm563_vm6, %v558_v37, %v560_v12  ;;  %v2511_v18 = vrot.slane %v2271_v19, %v537_v38  ;;  %v2514_v6 = vrot.slane %v2267_v15, %v537_v38  ;;  %v2518_v41 = vrot.slane %v2275_v21, %v537_v38 }
  0xfa   : > { %3022 = vst [vmem:[#allocation23_spill] sm:$0xff] %v2499_v56  ;;  %v678_v37 = vsel %vm669_vm4, %v2183_v1, %v649_v10  ;;  %v587_v4 = vmul.f32 %v2489_v33, %v567_v47  ;;  %v2525_v11 = vmul.f32 %v2492_v57, %v565_v58  ;;  %v2528_v19 = vmul.f32 %v2499_v56, %v564_v55  ;;  %v2575_v57 = vld [vmem:[#allocation5 + $0x38] ss:$0 sm:$0xff] }
  0xfb   : > { %v525_v8 = vpop.permute.xlu1 %524  ;;  %v523_v16 = vpop.permute.xlu0 %522  ;;  %3023 = vst [vmem:[#allocation24_spill] sm:$0xff] %v2511_v18  ;;  %3024 = vst [vmem:[#allocation25_spill] sm:$0xff] %v2514_v6  ;;  %v679_v15 = vsel %vm669_vm4, %v2199_v3, %v650_v20  ;;  %v661_v12 = vrot.slane %v584_v7, 4  ;;  %v680_v1 = vsel %vm669_vm4, %v2180_v0, %v651_v40  ;;  %v1320_v10 = vmul.f32 -2.0, %v584_v7 }
  0xfc   : > { %v533_v5 = vsel %vm530_vm7, %v523_v16, %v525_v8  ;;  %3025 = vst [vmem:[#allocation26_spill] sm:$0xff] %v2518_v41  ;;  %v664_v0 = vrot.slane %v587_v4, 4  ;;  %v662_v40 = vrot.slane %v2525_v11, 4  ;;  %v663_v7 = vrot.slane %v2528_v19, 4 }
  0xfd   : > { %v551_v34 = vmul.f32 %v2496_v53, %v533_v5  ;;  %v681_v5 = vsel %vm669_vm4, %v2191_v2, %v652_v45 }
  0xff   : > { %v1316_v63 = vmul.f32 -1.0, %v551_v34  ;;  %v529_v21 = vpop.permute.xlu1 %528  ;;  %v527_v38 = vpop.permute.xlu0 %526 }
 0x100   : > { %v534_v47 = vsel %vm530_vm7, %v529_v21, %v523_v16  ;;  %v531_v55 = vsel %vm530_vm7, %v527_v38, %v529_v21  ;;  %v532_v20 = vsel %vm530_vm7, %v525_v8, %v527_v38  ;;  %v2552_v16 = vld [vmem:[#allocation5 + $0x20] ss:$0 sm:$0xff]  ;;  %v682_v21 = vsel %vm669_vm4, %v551_v34, %v661_v12 }
 0x101   : > { %v1356_v58 = vadd.f32 %v1316_v63, %v2428_v42  ;;  %v554_v3 = vmul.f32 %v2511_v18, %v534_v47  ;;  %v2545_v53 = vmul.f32 %v2514_v6, %v532_v20  ;;  %v2548_v45 = vmul.f32 %v2518_v41, %v531_v55 }
 0x103   : > { %v1364_v8 = vadd.f32 %v1356_v58, %v2388_v27  ;;  %v1319_v42 = vmul.f32 -1.0, %v554_v3  ;;  %v1317_v63 = vmul.f32 -1.0, %v2545_v53  ;;  %v1318_v38 = vmul.f32 -1.0, %v2548_v45  ;;  %v591_v47 = vpop.permute.xlu1 %590  ;;  %v589_v20 = vpop.permute.xlu0 %588 }
 0x104   : > { %v599_v55 = vsel %vm596_vm8, %v589_v20, %v591_v47  ;;  %v683_v2 = vsel %vm669_vm4, %v2545_v53, %v662_v40  ;;  %v685_v18 = vsel %vm669_vm4, %v554_v3, %v664_v0  ;;  %v684_v12 = vsel %vm669_vm4, %v2548_v45, %v663_v7 }
 0x105   : > { %v1359_v27 = vadd.f32 %v1319_v42, %v2434_v48  ;;  %v1357_v58 = vadd.f32 %v1317_v63, %v2409_v54  ;;  %v1358_v41 = vadd.f32 %v1318_v38, %v2431_v51  ;;  %v2569_v6 = vmul.f32 %v2552_v16, %v599_v55  ;;  %v2585_v63 = vld [vmem:[#allocation5 + $0x28] ss:$0 sm:$0xff] }
 0x106   : > { %v2571_v33 = vpack.c.bf16 %v683_v2, %v679_v15  ;;  %v2573_v56 = vpack.c.bf16 %v685_v18, %v681_v5  ;;  %v2577_v40 = vpack.c.bf16 %v682_v21, %v678_v37  ;;  %v2579_v0 = vpack.c.bf16 %v684_v12, %v680_v1  ;;  %v2587_v2 = vld [vmem:[#allocation5 + $0x30] ss:$0 sm:$0xff] }
 0x107   : > { %v1367_v7 = vadd.f32 %v1359_v27, %v2392_v30  ;;  %v1365_v48 = vadd.f32 %v1357_v58, %v2364_v61  ;;  %v1366_v54 = vadd.f32 %v1358_v41, %v2390_v28  ;;  %v1324_v51 = vmul.f32 -1.0, %v2569_v6  ;;  %v595_v42 = vpop.permute.xlu1 %594  ;;  %v593_v18 = vpop.permute.xlu0 %592 }
 0x108   : > { %1713 = vmatprep.subr.bf16.mxu0 %v2571_v33  ;;  %1721 = vmatprep.subr.bf16.mxu1 %v2573_v56  ;;  %v600_v37 = vsel %vm596_vm8, %v595_v42, %v589_v20  ;;  %v597_v61 = vsel %vm596_vm8, %v593_v18, %v595_v42  ;;  %v598_v28 = vsel %vm596_vm8, %v591_v47, %v593_v18  ;;  %v1323_v21 = vmul.f32 -2.0, %v587_v4 }
 0x109   : > { %v1336_v30 = vadd.f32 %v1324_v51, %v551_v34  ;;  %v1360_v41 = vadd.f32 %v1324_v51, %v1320_v10  ;;  %v2598_v15 = vmul.f32 %v2575_v57, %v600_v37  ;;  %1715 = vmatpush1.bf16.msra.mxu0 %v2577_v40  ;;  %1723 = vmatpush1.bf16.msra.mxu1 %v2579_v0  ;;  %v686_v10 = vld [vmem:[%s2970_s2] sm:$0xf]  ;;  %v1321_v20 = vmul.f32 -2.0, %v2525_v11 }
 0x10a   : > { %v2603_v5 = vmul.f32 %v2585_v63, %v598_v28  ;;  %v2606_v1 = vmul.f32 %v2587_v2, %v597_v61  ;;  %v1322_v55 = vmul.f32 -2.0, %v2528_v19 }
 0x10b   : > { %v1344_v38 = vadd.f32 %v2471_v52, %v1336_v30  ;;  %v1368_v47 = vadd.f32 %v1364_v8, %v1360_v41  ;;  %v1327_v34 = vmul.f32 -1.0, %v2598_v15  ;;  %1694 = vmatprep.subr.msk.mxu1 %vm669_vm4, %v2598_v15 }
 0x10c   : > { %v1325_v12 = vmul.f32 -1.0, %v2603_v5  ;;  %v1326_v4 = vmul.f32 -1.0, %v2606_v1  ;;  %1691 = vmatprep.subr.msk.mxu0 %vm669_vm4, %v2603_v5 }
 0x10d   : > { %v1348_v52 = vand.u32 2147483647, %v1344_v38  ;;  %v1372_v8 = vand.u32 2147483647, %v1368_v47  ;;  %v1339_v27 = vadd.f32 %v1327_v34, %v554_v3  ;;  %v1363_v58 = vadd.f32 %v1327_v34, %v1323_v21  ;;  %1692 = vmatpush1.msk.msra.mxu0 %vm669_vm4, %v2569_v6  ;;  %1695 = vmatpush1.msk.msra.mxu1 %vm669_vm4, %v2606_v1 }
 0x10e   : > { %v1337_v11 = vadd.f32 %v1325_v12, %v2545_v53  ;;  %v1338_v19 = vadd.f32 %v1326_v4, %v2548_v45  ;;  %v1361_v51 = vadd.f32 %v1325_v12, %v1321_v20  ;;  %v1362_v42 = vadd.f32 %v1326_v4, %v1322_v55  ;;  %1693 = vmatmul.mubr.msk.f32.vlgmr.msra.gmra.mrb[0].mxu0 %vm693_vm9, %v686_v10 }
 0x10f   : > { %v1347_v18 = vadd.f32 %v2477_v25, %v1339_v27  ;;  %v1371_v37 = vadd.f32 %v1367_v7, %v1363_v58  ;;  %1696 = vmatmul.mubr.msk.f32.vlgmr.msra.gmra.mrb[0].mxu1 %vm693_vm9, %v686_v10  ;;  %1725 = vmatprep.subr.bf16.mxu0 %v2425_v9  ;;  %v2631_v3 = vadd.f32 %v1372_v8, %v1348_v52  ;;  %v1136_v27 = vld [vmem:[%s2973_s5] sm:$0xf] }
 0x110   : > { %v1345_v61 = vadd.f32 %v2482_v14, %v1337_v11  ;;  %v1346_v28 = vadd.f32 %v2484_v59, %v1338_v19  ;;  %v1369_v53 = vadd.f32 %v1365_v48, %v1361_v51  ;;  %v1370_v30 = vadd.f32 %v1366_v54, %v1362_v42  ;;  %1741 = vmatprep.subr.bf16.mxu1 %v2455_v49 }
 0x111   : > { %v1351_v45 = vand.u32 2147483647, %v1347_v18  ;;  %v1375_v41 = vand.u32 2147483647, %v1371_v37  ;;  %1727 = vmatpush1.bf16.msra.mxu0 %v2447_v50  ;;  %1743 = vmatpush1.bf16.msra.mxu1 %v2457_v62  ;;  %v3026_v14 = vmov 0.0  }
 0x112   : > { %v1349_v25 = vand.u32 2147483647, %v1345_v61  ;;  %v1350_v7 = vand.u32 2147483647, %v1346_v28  ;;  %v1373_v21 = vand.u32 2147483647, %v1369_v53  ;;  %1729 = vmatprep.subr.bf16.mxu0 %v2571_v33  ;;  %1745 = vmatprep.subr.bf16.mxu1 %v2573_v56 }
 0x113   : > { %v1374_v9 = vand.u32 2147483647, %v1370_v30  ;;  %1210 = vmatprep.mubr.f32.mxu0 %v3026_v14  ;;  %1281 = vmatprep.mubr.f32.mxu1 %v3026_v14  ;;  %v2642_v59 = vadd.f32 %v1375_v41, %v1351_v45 }
 0x114   : > { %v2644_v49 = vadd.f32 %v1373_v21, %v1349_v25 }
 0x115   : > { %1731 = vmatpush1.bf16.msra.mxu0 %v2577_v40  ;;  %1747 = vmatpush1.bf16.msra.mxu1 %v2579_v0  ;;  %v2648_v50 = vadd.f32 %v1374_v9, %v1350_v7 }
 0x118   : > { %v691_v62 = vpop.permute.xlu0 %690 }
 0x1e1   : > { %v775_v48 = vpop.f32.mrb[0].mxu0 }
 0x1e2   : > { %v846_v33 = vpop.f32.mrb[0].mxu1  ;;  %v776_v54 = vadd.f32 %v775_v48, %v691_v62  ;;  %v777_v56 = vpop.f32.mrb[1].mxu0 }
 0x1e3   : > { %v847_v38 = vadd.f32 %v846_v33, %v691_v62  ;;  %v778_v47 = vadd.f32 %v777_v56, %v691_v62  ;;  %v848_v34 = vpop.f32.mrb[1].mxu1 }
 0x1e4   : > { %vm851_vm10 = vcmp.ge.f32.partialorder %v776_v54, 0.0  ;;  %v855_v10 = vmul.f32 0.2, %v776_v54  ;;  %v849_v40 = vadd.f32 %v848_v34, %v691_v62 }
 0x1e5   : > { %vm853_vm11 = vcmp.ge.f32.partialorder %v847_v38, 0.0  ;;  %v857_v20 = vmul.f32 0.2, %v847_v38  ;;  %v856_v12 = vmul.f32 0.2, %v778_v47  ;;  %vm852_vm12 = vcmp.ge.f32.partialorder %v778_v47, 0.0 }
 0x1e6   : > { %v2650_v55 = vsel %vm851_vm10, %v776_v54, %v855_v10  ;;  %v858_v52 = vmul.f32 0.2, %v849_v40  ;;  %vm854_vm13 = vcmp.ge.f32.partialorder %v849_v40, 0.0 }
 0x1e7   : > { %v2652_v4 = vsel %vm853_vm11, %v847_v38, %v857_v20  ;;  %879 = vrot.lane.b32.xlu1 %v2650_v55, %s1973_s13  ;;  %v2658_v0 = vsel %vm852_vm12, %v778_v47, %v856_v12 }
 0x1e8   : > { %883 = vrot.lane.b32.xlu0 %v2652_v4, %s1973_s13  ;;  %v2664_v8 = vsel %vm854_vm13, %v849_v40, %v858_v52 }
 0x1eb   : > { %881 = vrot.lane.b32.xlu1 %v2658_v0, %s1973_s13 }
 0x1ec   : > { %911 = vrot.lane.b32.xlu0 %v2650_v55, %s1974_s11 }
 0x1ef   : > { %885 = vrot.lane.b32.xlu1 %v2664_v8, %s1973_s13 }
 0x1f0   : > { %915 = vrot.lane.b32.xlu0 %v2652_v4, %s1974_s11 }
 0x1f3   : > { %913 = vrot.lane.b32.xlu1 %v2658_v0, %s1974_s11 }
 0x1f4   : > { %863 = vrot.lane.b32.xlu0 %v2650_v55, %s1975_s21 }
 0x1f7   : > { %917 = vrot.lane.b32.xlu1 %v2664_v8, %s1974_s11  ;;  %s2924_s11 = scalar_lea.hbm %s2976_s8, %s1707_s22 }
 0x1f8   : > { %867 = vrot.lane.b32.xlu0 %v2652_v4, %s1975_s21 }
 0x1fb   : > { %865 = vrot.lane.b32.xlu1 %v2658_v0, %s1975_s21 }
 0x1fc   : > { %895 = vrot.lane.b32.xlu0 %v2650_v55, %s1976_s18 }
 0x1ff   : > { %869 = vrot.lane.b32.xlu1 %v2664_v8, %s1975_s21 }
 0x200   : > { %899 = vrot.lane.b32.xlu0 %v2652_v4, %s1976_s18 }
 0x203   : > { %897 = vrot.lane.b32.xlu1 %v2658_v0, %s1976_s18 }
 0x204   : > { %927 = vrot.lane.b32.xlu0 %v2650_v55, %s1977_s19 }
 0x207   : > { %901 = vrot.lane.b32.xlu1 %v2664_v8, %s1976_s18  ;;  %s1983_s18 = smov [#allocation7]  }
 0x208   : > { %931 = vrot.lane.b32.xlu0 %v2652_v4, %s1977_s19 }
 0x20b   : > { %929 = vrot.lane.b32.xlu1 %v2658_v0, %s1977_s19 }
 0x20c   : > { %959 = vrot.lane.b32.xlu0 %v2650_v55, %s1978_s14 }
 0x20f   : > { %933 = vrot.lane.b32.xlu1 %v2664_v8, %s1977_s19  ;;  %s1901_s19 = sshll.u32 %s1983_s18, 4  ;;  %s1902_s19 = int_to_ptr.vmem [resolvable:$false] %s1901_s19 }
 0x210   : > { %963 = vrot.lane.b32.xlu0 %v2652_v4, %s1978_s14 }
 0x213   : > { %961 = vrot.lane.b32.xlu1 %v2658_v0, %s1978_s14 }
 0x214   : > { %943 = vrot.lane.b32.xlu0 %v2650_v55, %s1979_s25 }
 0x217   : > { %965 = vrot.lane.b32.xlu1 %v2664_v8, %s1978_s14  ;;  %s1903_s14 = scalar_lea.vmem %s1902_s19, 1024 }
 0x218   : > { %947 = vrot.lane.b32.xlu0 %v2652_v4, %s1979_s25 }
 0x21b   : > { %945 = vrot.lane.b32.xlu1 %v2658_v0, %s1979_s25 }
 0x21c   : > { %975 = vrot.lane.b32.xlu0 %v2650_v55, %s1981_s15 }
 0x21f   : > { %949 = vrot.lane.b32.xlu1 %v2664_v8, %s1979_s25 }
 0x220   : > { %979 = vrot.lane.b32.xlu0 %v2652_v4, %s1981_s15 }
 0x223   : > { %977 = vrot.lane.b32.xlu1 %v2658_v0, %s1981_s15 }
 0x224   : > { %1139 = vperm.xlu0 %1833, %v1136_v27  }
 0x227   : > { %981 = vrot.lane.b32.xlu1 %v2664_v8, %s1981_s15 }
 0x259   : > { %v880_v58 = vpop.permute.xlu1 %879 }
 0x25a   : > { %v884_v11 = vpop.permute.xlu0 %883 }
 0x25d   : > { %v882_v19 = vpop.permute.xlu1 %881 }
 0x25e   : > { %v912_v51 = vpop.permute.xlu0 %911  ;;  %v889_v30 = vsel %vm398_vm0, %v880_v58, %v882_v19  ;;  %v888_v54 = vsel %vm398_vm0, %v882_v19, %v884_v11 }
 0x25f   : > { %v892_v9 = vmul.f32 %v889_v30, %v2278_v22 }
 0x261   : > { %v886_v42 = vpop.permute.xlu1 %885  ;;  %v996_v12 = vrot.slane %v892_v9, 4 }
 0x262   : > { %v916_v18 = vpop.permute.xlu0 %915  ;;  %v890_v45 = vsel %vm398_vm0, %v886_v42, %v880_v58  ;;  %v887_v25 = vsel %vm398_vm0, %v884_v11, %v886_v42 }
 0x263   : > { %v891_v48 = vmul.f32 %v890_v45, %v2282_v24  ;;  %v894_v56 = vmul.f32 %v887_v25, %v2287_v26  ;;  %v3029_v45 = vld [vmem:[#allocation16_spill] sm:$0xff] }
 0x265   : > { %v914_v37 = vpop.permute.xlu1 %913  ;;  %v995_v52 = vrot.slane %v891_v48, 4  ;;  %v998_v58 = vrot.slane %v894_v56, 4 }
 0x266   : > { %v864_v61 = vpop.permute.xlu0 %863  ;;  %v921_v62 = vsel %vm464_vm1, %v912_v51, %v914_v37  ;;  %v920_v33 = vsel %vm464_vm1, %v914_v37, %v916_v18  ;;  %v3027_v37 = vld [vmem:[#allocation15_spill] sm:$0xff] }
 0x267   : > { %v924_v34 = vmul.f32 %v921_v62, %v2295_v31  ;;  %v925_v40 = vmul.f32 %v920_v33, %v2317_v39 }
 0x269   : > { %v918_v28 = vpop.permute.xlu1 %917  ;;  %v1008_v39 = vrot.slane %v924_v34, 4 }
 0x26a   : > { %v868_v53 = vpop.permute.xlu0 %867  ;;  %v922_v22 = vsel %vm464_vm1, %v918_v28, %v912_v51  ;;  %v919_v31 = vsel %vm464_vm1, %v916_v18, %v918_v28  ;;  %v1009_v28 = vrot.slane %v925_v40, 4  ;;  %v3031_v40 = vld [vmem:[#allocation17_spill] sm:$0xff] }
 0x26b   : > { %v923_v11 = vmul.f32 %v922_v22, %v2305_v35 }
 0x26d   : > { %v866_v41 = vpop.permute.xlu1 %865  ;;  %v1007_v62 = vrot.slane %v923_v11, 4 }
 0x26e   : > { %v896_v7 = vpop.permute.xlu0 %895  ;;  %v873_v21 = vsel %vm365_vm2, %v864_v61, %v866_v41  ;;  %v872_v26 = vsel %vm365_vm2, %v866_v41, %v868_v53  ;;  %v3030_v41 = vld [vmem:[#allocation18_spill] sm:$0xff] }
 0x26f   : > { %v876_v38 = vmul.f32 %v873_v21, %v2309_v36  ;;  %v893_v36 = vmul.f32 %v888_v54, %v2298_v32 }
 0x271   : > { %v870_v47 = vpop.permute.xlu1 %869  ;;  %v1040_v19 = vsel %vm669_vm4, %v876_v38, %v996_v12  ;;  %v997_v21 = vrot.slane %v893_v36, 4  ;;  %v3032_v36 = vld [vmem:[#allocation19_spill] sm:$0xff] }
 0x272   : > { %v900_v10 = vpop.permute.xlu0 %899  ;;  %v871_v24 = vsel %vm365_vm2, %v868_v53, %v870_v47  ;;  %v874_v20 = vsel %vm365_vm2, %v870_v47, %v864_v61  ;;  %v877_v61 = vmul.f32 %v872_v26, %v3027_v37 }
 0x273   : > { %v875_v27 = vmul.f32 %v874_v20, %v2326_v44  ;;  %v878_v51 = vmul.f32 %v871_v24, %v2332_v46  ;;  %v3028_v44 = vld [vmem:[#allocation14_spill] sm:$0xff]  ;;  %v1076_v46 = vrot.slane %v1040_v19, 4 }
 0x274   : > { %v926_v30 = vmul.f32 %v919_v31, %v3028_v44  ;;  %v1041_v38 = vsel %vm669_vm4, %v877_v61, %v997_v21 }
 0x275   : > { %v898_v42 = vpop.permute.xlu1 %897  ;;  %v1039_v9 = vsel %vm669_vm4, %v875_v27, %v995_v52  ;;  %v1042_v48 = vsel %vm669_vm4, %v878_v51, %v998_v58  ;;  %v1132_v11 = vsel %vm669_vm4, %v2603_v5, %v1076_v46 }
 0x276   : > { %v928_v53 = vpop.permute.xlu0 %927  ;;  %v904_v32 = vsel %vm431_vm3, %v898_v42, %v900_v10  ;;  %v905_v18 = vsel %vm431_vm3, %v896_v7, %v898_v42  ;;  %v1010_v20 = vrot.slane %v926_v30, 4  ;;  %v1075_v12 = vrot.slane %v1039_v9, 4 }
 0x277   : > { %v908_v35 = vmul.f32 %v905_v18, %v3029_v45  ;;  %v909_v25 = vmul.f32 %v904_v32, %v3030_v41  ;;  %v1078_v31 = vrot.slane %v1042_v48, 4 }
 0x278   : > { %v1131_v5 = vsel %vm669_vm4, %v2569_v6, %v1075_v12 }
 0x279   : > { %v2771_v33 = vsel %vm669_vm4, %v908_v35, %v1008_v39  ;;  %v2774_v54 = vsel %vm669_vm4, %v909_v25, %v1009_v28  ;;  %v902_v56 = vpop.permute.xlu1 %901  ;;  %v1134_v30 = vsel %vm669_vm4, %v2598_v15, %v1078_v31 }
 0x27a   : > { %v1081_v47 = vrot.slane %v2771_v33, 4  ;;  %v932_v34 = vpop.permute.xlu0 %931  ;;  %v903_v22 = vsel %vm431_vm3, %v900_v10, %v902_v56  ;;  %v906_v24 = vsel %vm431_vm3, %v902_v56, %v896_v7  ;;  %v1083_v27 = vrot.slane %v2774_v54, 4 }
 0x27b   : > { %v907_v26 = vmul.f32 %v906_v24, %v3031_v40  ;;  %v910_v52 = vmul.f32 %v903_v22, %v3032_v36  ;;  %v1077_v10 = vrot.slane %v1041_v38, 4  ;;  %vm1419_vm3 = vcmask 130048  }
 0x27c   : > { %v1082_v58 = vsel %vm669_vm4, %v1076_v46, %v1081_v47 }
 0x27d   : > { %v1043_v19 = vsel %vm669_vm4, %v907_v26, %v1007_v62  ;;  %v2792_v7 = vsel %vm669_vm4, %v910_v52, %v1010_v20  ;;  %v930_v51 = vpop.permute.xlu1 %929  ;;  %v1732_v42 = vpack.c.bf16 %v1082_v58, %v1132_v11  ;;  %v1084_v45 = vsel %vm669_vm4, %v1077_v10, %v1083_v27  ;;  %v3033_v26 = vld [vmem:[#allocation21_spill] sm:$0xff] }
 0x27e   : > { %v1079_v39 = vrot.slane %v1043_v19, 4  ;;  %v1085_v37 = vrot.slane %v2792_v7, 4  ;;  %v960_v61 = vpop.permute.xlu0 %959  ;;  %v936_v32 = vsel %vm497_vm5, %v930_v51, %v932_v34  ;;  %v937_v18 = vsel %vm497_vm5, %v928_v53, %v930_v51 }
 0x27f   : > { %1733 = vmatprep.subr.bf16.mxu0 %v1732_v42  ;;  %v939_v35 = vmul.f32 %v937_v18, %v2383_v23  ;;  %v940_v41 = vmul.f32 %v936_v32, %v2400_v29  ;;  %v1133_v9 = vsel %vm669_vm4, %v2606_v1, %v1077_v10  ;;  %v3034_v18 = vld [vmem:[#allocation23_spill] sm:$0xff] }
 0x280   : > { %v1080_v28 = vsel %vm669_vm4, %v1075_v12, %v1079_v39  ;;  %v1086_v44 = vsel %vm669_vm4, %v1078_v31, %v1085_v37  ;;  %v1750_v62 = vpack.c.bf16 %v1084_v45, %v1133_v9  ;;  %v3036_v45 = vld [vmem:[#allocation22_spill] sm:$0xff] }
 0x281   : > { %v934_v25 = vpop.permute.xlu1 %933  ;;  %v1734_v21 = vpack.c.bf16 %v1080_v28, %v1131_v5  ;;  %v1748_v6 = vpack.c.bf16 %v1086_v44, %v1134_v30  ;;  %v1019_v48 = vrot.slane %v939_v35, 4  ;;  %v1020_v15 = vrot.slane %v940_v41, 4  ;;  %v3035_v28 = vld [vmem:[#allocation20_spill] sm:$0xff]  ;;  %v3037_v41 = vld [vmem:[#allocation25_spill] sm:$0xff] }
 0x282   : > { %v964_v46 = vpop.permute.xlu0 %963  ;;  %v935_v38 = vsel %vm497_vm5, %v932_v34, %v934_v25  ;;  %v938_v23 = vsel %vm497_vm5, %v934_v25, %v928_v53 }
 0x283   : > { %1735 = vmatpush1.bf16.msra.mxu0 %v1734_v21  ;;  %1749 = vmatprep.subr.bf16.mxu1 %v1748_v6  ;;  %v1047_v24 = vsel %vm669_vm4, %v2650_v55, %v1019_v48  ;;  %v1048_v20 = vsel %vm669_vm4, %v2658_v0, %v1020_v15  ;;  %v941_v12 = vmul.f32 %v935_v38, %v2403_v43 }
 0x284   : > { %1751 = vmatpush1.bf16.msra.mxu1 %v1750_v62  ;;  %v942_v34 = vmul.f32 %v938_v23, %v2397_v17  ;;  %v1087_v31 = vrot.slane %v1047_v24, 4  ;;  %v1089_v58 = vrot.slane %v1048_v20, 4  ;;  %v3038_v23 = vld [vmem:[#allocation26_spill] sm:$0xff] }
 0x285   : > { %v962_v56 = vpop.permute.xlu1 %961  ;;  %v1021_v19 = vrot.slane %v941_v12, 4 }
 0x286   : > { %v944_v29 = vpop.permute.xlu0 %943  ;;  %v968_v22 = vsel %vm563_vm6, %v962_v56, %v964_v46  ;;  %v969_v1 = vsel %vm563_vm6, %v960_v61, %v962_v56  ;;  %v1022_v51 = vrot.slane %v942_v34, 4  ;;  %v1090_v25 = vsel %vm669_vm4, %v1081_v47, %v1089_v58 }
 0x287   : > { %v971_v53 = vmul.f32 %v969_v1, %v2480_v60  ;;  %v972_v36 = vmul.f32 %v968_v22, %v3033_v26  ;;  %v1088_v21 = vsel %vm669_vm4, %v1079_v39, %v1087_v31  ;;  %v1049_v6 = vsel %vm669_vm4, %v2652_v4, %v1021_v19  ;;  %v3039_v1 = vld [vmem:[#allocation24_spill] sm:$0xff] }
 0x288   : > { %v1091_v20 = vrot.slane %v1049_v6, 4 }
 0x289   : > { %v966_v40 = vpop.permute.xlu1 %965  ;;  %v1031_v43 = vrot.slane %v971_v53, 4  ;;  %v1032_v32 = vrot.slane %v972_v36, 4 }
 0x28a   : > { %v948_v52 = vpop.permute.xlu0 %947  ;;  %v967_v11 = vsel %vm563_vm6, %v964_v46, %v966_v40  ;;  %v970_v10 = vsel %vm563_vm6, %v966_v40, %v960_v61  ;;  %v1050_v46 = vsel %vm669_vm4, %v2664_v8, %v1022_v51 }
 0x28b   : > { %v973_v5 = vmul.f32 %v967_v11, %v3034_v18  ;;  %v974_v44 = vmul.f32 %v970_v10, %v3035_v28  ;;  %v1093_v12 = vrot.slane %v1050_v46, 4 }
 0x28d   : > { %v946_v42 = vpop.permute.xlu1 %945  ;;  %v1033_v39 = vrot.slane %v973_v5, 4  ;;  %v1034_v38 = vrot.slane %v974_v44, 4 }
 0x28e   : > { %v952_v17 = vsel %vm530_vm7, %v946_v42, %v948_v52  ;;  %v953_v60 = vsel %vm530_vm7, %v944_v29, %v946_v42  ;;  %v976_v30 = vpop.permute.xlu0 %975 }
 0x28f   : > { %v955_v35 = vmul.f32 %v953_v60, %v3036_v45  ;;  %v956_v61 = vmul.f32 %v952_v17, %v3037_v41  ;;  %v1092_v17 = vsel %vm669_vm4, %v1083_v27, %v1091_v20 }
 0x291   : > { %v1051_v9 = vsel %vm669_vm4, %v955_v35, %v1031_v43  ;;  %v1052_v62 = vsel %vm669_vm4, %v956_v61, %v1032_v32  ;;  %v950_v48 = vpop.permute.xlu1 %949  ;;  %v1094_v43 = vsel %vm669_vm4, %v1085_v37, %v1093_v12  ;;  %v1135_v35 = vld [vmem:[%s2972_s4] sm:$0xf] }
 0x292   : > { %v1095_v15 = vrot.slane %v1051_v9, 4  ;;  %v1097_v56 = vrot.slane %v1052_v62, 4  ;;  %v951_v33 = vsel %vm530_vm7, %v948_v52, %v950_v48  ;;  %v954_v47 = vsel %vm530_vm7, %v950_v48, %v944_v29  ;;  %v980_v53 = vpop.permute.xlu0 %979 }
 0x293   : > { %v957_v22 = vmul.f32 %v951_v33, %v3038_v23  ;;  %v958_v24 = vmul.f32 %v954_v47, %v3039_v1  ;;  %v1396_v62 = vrot.slane %v2631_v3, 4  ;;  %v1385_v48 = vrot.slane %v2658_v0, 4 }
 0x294   : > { %v1098_v34 = vsel %vm669_vm4, %v1089_v58, %v1097_v56  ;;  %v1096_v40 = vsel %vm669_vm4, %v1087_v31, %v1095_v15  ;;  %v1384_v33 = vrot.slane %v2650_v55, 4  ;;  %v1387_v0 = vrot.slane %v2664_v8, 4 }
 0x295   : > { %v1053_v26 = vsel %vm669_vm4, %v957_v22, %v1033_v39  ;;  %v1054_v36 = vsel %vm669_vm4, %v958_v24, %v1034_v38  ;;  %v978_v52 = vpop.permute.xlu1 %977  ;;  %v1736_v11 = vpack.c.bf16 %v1098_v34, %v1090_v25  ;;  %v1738_v29 = vpack.c.bf16 %v1096_v40, %v1088_v21  ;;  %v1837_v40 = vld [vmem:[%s2169_s16] sm:$0xff] }
 0x296   : > { %v1099_v10 = vrot.slane %v1053_v26, 4  ;;  %v1101_v19 = vrot.slane %v1054_v36, 4  ;;  %v984_v51 = vsel %vm596_vm8, %v978_v52, %v980_v53  ;;  %v985_v42 = vsel %vm596_vm8, %v976_v30, %v978_v52 }
 0x297   : > { %v987_v58 = vmul.f32 %v2552_v16, %v985_v42  ;;  %v988_v31 = vmul.f32 %v2585_v63, %v984_v51  ;;  %1737 = vmatprep.subr.bf16.mxu0 %v1736_v11  ;;  %v1398_v38 = vrot.slane %v2648_v50, 4  ;;  %v1386_v22 = vrot.slane %v2652_v4, 4  ;;  %v3041_v11 = vld [vmem:[#allocation12_spill] sm:$0xff]  ;;  %v1838_v42 = vld [vmem:[%s2169_s16 + $0x8] sm:$0xff]  ;;  %s336_s16 = scalar_lea.vmem [#allocation7], %s1686_s17 }
 0x298   : > { %1739 = vmatpush1.bf16.msra.mxu0 %v1738_v29  ;;  %v1102_v32 = vsel %vm669_vm4, %v1093_v12, %v1101_v19  ;;  %v1100_v60 = vsel %vm669_vm4, %v1091_v20, %v1099_v10  ;;  %v3040_v12 = vld [vmem:[#allocation13_spill] sm:$0xff]  ;;  %v1404_v4 = vsel %vm669_vm4, %v1837_v40, %v1384_v33  ;;  %v1399_v36 = vrot.slane %v2642_v59, 4  ;;  %s1596_s26 = sshll.u32 %s336_s16, 4  ;;  %s2926_s26 = int_to_ptr.vmem [resolvable:$true] %s1596_s26 }
 0x299   : > { %v1103_v18 = vrot.slane %v987_v58, 4  ;;  %v1105_v5 = vrot.slane %v988_v31, 4  ;;  %v982_v28 = vpop.permute.xlu1 %981  ;;  %v1752_v16 = vpack.c.bf16 %v1102_v32, %v1094_v43  ;;  %v1754_v44 = vpack.c.bf16 %v1100_v60, %v1092_v17  ;;  %s1897_s21 = scalar_lea.vmem %s2926_s26, 512  ;;  %p1904_p10 = scmp.lt.s32.totalorder %s2926_s26, %s1902_s19 }
 0x29a   : > { %v983_v63 = vsel %vm596_vm8, %v980_v53, %v982_v28  ;;  %v986_v7 = vsel %vm596_vm8, %v982_v28, %v976_v30  ;;  %v1407_v29 = vsel %vm669_vm4, %v3041_v11, %v1387_v0  ;;  %v1406_v59 = vsel %vm669_vm4, %v1838_v42, %v1386_v22  ;;  %p1898_p4 = scmp.ne.s32.totalorder %s2926_s26, %s1897_s21  ;;  %p1905_p13 = scmp.lt.s32.totalorder %s1903_s14, %s1897_s21 }
 0x29b   : > { %v989_v37 = vmul.f32 %v2587_v2, %v983_v63  ;;  %v990_v54 = vmul.f32 %v2575_v57, %v986_v7  ;;  %1753 = vmatprep.subr.bf16.mxu1 %v1752_v16  ;;  %v1106_v27 = vsel %vm669_vm4, %v1097_v56, %v1105_v5  ;;  %v1104_v45 = vsel %vm669_vm4, %v1095_v15, %v1103_v18  ;;  %v1413_v2 = vld [vmem:[%s2975_s7] sm:$0xff] }
 0x29c   : > { %1162 = vmatprep.subr.mxu0 %v1106_v27  ;;  %1755 = vmatpush1.bf16.msra.mxu1 %v1754_v44  ;;  %p1899_p6 = pnand %p1898_p4, %p2120_p12  ;;  %p1906_p3 = por %p1905_p13, %p1904_p10 }
 0x29d   : > { %v1107_v41 = vrot.slane %v989_v37, 4  ;;  %v1109_v61 = vrot.slane %v990_v54, 4  ;;  %1163 = vmatpush1.msra.mxu0 %v1104_v45  ;;  %1416 = vperm.xlu1 %1834, %v1413_v2  }
 0x29e   : > { %1697 = vmatmul.mubr.msk.f32.vlgmr.msra.gmra.mrb[2].mxu0 %vm1142_vm14, %v1135_v35  ;;  %p1900_p8 = pneg %p1899_p6 }
 0x29f   : > { %v1110_v13 = vsel %vm669_vm4, %v1101_v19, %v1109_v61  ;;  %v1108_v57 = vsel %vm669_vm4, %v1099_v10, %v1107_v41  ;;  %1487 = vmatprep.mubr.f32.mxu0 %v3026_v14  ;;  %v1412_v19 = vld [vmem:[%s2974_s6] sm:$0xff] }
 0x2a0   : > { %1233 = vmatprep.subr.mxu1 %v1110_v13  ;;  %p1907_p7 = pnand %p1906_p3, %p1900_p8 }
 0x2a1   : > { %1234 = vmatpush1.msra.mxu1 %v1108_v57 }
 0x2a2   : > { %1698 = vmatmul.mubr.msk.f32.vlgmr.msra.gmra.mrb[2].mxu1 %vm1142_vm14, %v1135_v35 }
 0x2a3   : > { %1558 = vmatprep.mubr.f32.mxu1 %v3026_v14  ;;  %v1140_v30 = vpop.permute.xlu0 %1139  ;;  %v1397_v14 = vrot.slane %v2644_v49, 4  ;;  %v1405_v49 = vsel %vm669_vm4, %v3040_v12, %v1385_v48 }
 0x31c   : > { %v1417_v31 = vpop.permute.xlu1 %1416 }
 0x371   : > { %v1212_v25 = vpop.f32.mrb[2].mxu0 }
 0x372   : > { %v1213_v21 = vadd.f32 %v1212_v25, %v1140_v30  ;;  %v1214_v6 = vpop.f32.mrb[3].mxu0 }
 0x373   : > { %v1215_v46 = vadd.f32 %v1214_v6, %v1140_v30 }
 0x374   : > { %vm1288_vm15 = vcmp.ge.f32.partialorder %v1213_v21, 0.0  ;;  %v1292_v9 = vmul.f32 0.2, %v1213_v21 }
 0x375   : > { %vm1289_vm0 = vcmp.ge.f32.partialorder %v1215_v46, 0.0  ;;  %v1293_v15 = vmul.f32 0.2, %v1215_v46  ;;  %v1283_v56 = vpop.f32.mrb[2].mxu1 }
 0x376   : > { %v1296_v47 = vsel %vm1288_vm15, %v1213_v21, %v1292_v9  ;;  %v1284_v39 = vadd.f32 %v1283_v56, %v1140_v30  ;;  %v1285_v23 = vpop.f32.mrb[3].mxu1 }
 0x377   : > { %v1408_v1 = vsel %vm669_vm4, %v1296_v47, %v1396_v62  ;;  %v1297_v3 = vsel %vm1289_vm0, %v1215_v46, %v1293_v15  ;;  %v1286_v24 = vadd.f32 %v1285_v23, %v1140_v30 }
 0x378   : > { %vm1290_vm1 = vcmp.ge.f32.partialorder %v1284_v39, 0.0  ;;  %v1294_v20 = vmul.f32 0.2, %v1284_v39  ;;  %v1409_v55 = vsel %vm669_vm4, %v1297_v3, %v1397_v14  ;;  %v1758_v26 = vpack.c.bf16 %v1408_v1, %v1404_v4 }
 0x379   : > { %vm1291_vm2 = vcmp.ge.f32.partialorder %v1286_v24, 0.0  ;;  %v1295_v34 = vmul.f32 0.2, %v1286_v24  ;;  %v1756_v50 = vpack.c.bf16 %v1409_v55, %v1405_v49 }
 0x37a   : > { %v1298_v53 = vsel %vm1290_vm1, %v1284_v39, %v1294_v20 }
 0x37b   : > { %v1410_v8 = vsel %vm669_vm4, %v1298_v53, %v1398_v38  ;;  %v1299_v52 = vsel %vm1291_vm2, %v1286_v24, %v1295_v34  ;;  %1757 = vmatprep.subr.bf16.mxu0 %v1756_v50 }
 0x37c   : > { %1759 = vmatpush1.bf16.msra.mxu0 %v1758_v26  ;;  %v1411_v10 = vsel %vm669_vm4, %v1299_v52, %v1399_v36  ;;  %v1762_v58 = vpack.c.bf16 %v1410_v8, %v1406_v59 }
 0x37d   : > { %v1760_v51 = vpack.c.bf16 %v1411_v10, %v1407_v29 }
 0x37f   : > { %1761 = vmatprep.subr.bf16.mxu1 %v1760_v51  ;;  %1699 = vmatmul.mubr.msk.f32.vlgmr.msra.gmra.mrb[4].mxu0 %vm1419_vm3, %v1412_v19 }
 0x380   : > { %1763 = vmatpush1.bf16.msra.mxu1 %v1762_v58 }
 0x383   : > { %1700 = vmatmul.mubr.msk.f32.vlgmr.msra.gmra.mrb[4].mxu1 %vm1419_vm3, %v1412_v19 }
 0x452   : > { %v1489_v43 = vpop.f32.mrb[4].mxu0 }
 0x453   : > { %v1490_v32 = vadd.f32 %v1489_v43, %v1417_v31  ;;  %v1491_v17 = vpop.f32.mrb[5].mxu0 }
 0x454   : > { %v1492_v60 = vadd.f32 %v1491_v17, %v1417_v31 }
 0x455   : > { %vm1565_vm5 = vcmp.ge.f32.partialorder %v1490_v32, 0.0  ;;  %v1569_v18 = vmul.f32 0.1, %v1490_v32 }
 0x456   : > { %vm1566_vm6 = vcmp.ge.f32.partialorder %v1492_v60, 0.0  ;;  %v1570_v5 = vmul.f32 0.1, %v1492_v60  ;;  %v1560_v28 = vpop.f32.mrb[4].mxu1 }
 0x457   : > { %v1573_v16 = vsel %vm1565_vm5, %v1490_v32, %v1569_v18  ;;  %v1561_v44 = vadd.f32 %v1560_v28, %v1417_v31  ;;  %v1562_v63 = vpop.f32.mrb[5].mxu1 }
 0x458   : > { %1577 = vst [vmem:[%s336_s16] sm:$0xff] %v1573_v16  ;;  %v1574_v7 = vsel %vm1566_vm6, %v1492_v60, %v1570_v5  ;;  %v1563_v37 = vadd.f32 %v1562_v63, %v1417_v31 }
 0x459   : > { %1578 = vst [vmem:[%s336_s16 + $0x8] sm:$0xff] %v1574_v7  ;;  %vm1567_vm4 = vcmp.ge.f32.partialorder %v1561_v44, 0.0  ;;  %v1571_v54 = vmul.f32 0.1, %v1561_v44 }
 0x45a   : > { %vm1568_vm7 = vcmp.ge.f32.partialorder %v1563_v37, 0.0  ;;  %v1572_v27 = vmul.f32 0.1, %v1563_v37 }
 0x45b   : > { %v1575_v45 = vsel %vm1567_vm4, %v1561_v44, %v1571_v54 }
 0x45c   : > { %1579 = vst [vmem:[%s336_s16 + $0x10] sm:$0xff] %v1575_v45  ;;  %v1576_v35 = vsel %vm1568_vm7, %v1563_v37, %v1572_v27 }
 0x45d   : > { %1580 = vst [vmem:[%s336_s16 + $0x18] sm:$0xff] %v1576_v35 }
 0x45e   : > { %1910 = shalt.err (!%p1907_p7)
}
 0x45f   : > { %s1911_s20 = scalar_lea.hbm %s2924_s11, 512  ;;  %s1915_s17 = scalar_lea.hbm %s2976_s8, 1024 }
 0x460   : > { %p1912_p9 = scmp.ne.s32.totalorder %s2924_s11, %s1911_s20  ;;  %p1916_p0 = scmp.lt.u32.totalorder %s2924_s11, %s2976_s8 }
 0x461   : > { %p1917_p11 = scmp.lt.u32.totalorder %s1915_s17, %s1911_s20  ;;  %p1919_p4 = scmp.lt.u32.totalorder %s1911_s20, %s2924_s11 }
 0x462   : > { %p1913_p2 = pnand %p1912_p9, %p2120_p12 }
 0x463   : > { %p1918_p1 = por %p1917_p11, %p1916_p0 }
 0x464   : > { %p1914_p5 = pneg %p1913_p2 }
 0x465   : > { %p1920_p6 = por %p1919_p4, %p1918_p1 }
 0x467   : > { %p1921_p8 = pnand %p1920_p6, %p1914_p5 }
 0x469   : > { %1924 = shalt.err (!%p1921_p8)
}
 0x46a   : > { %1770 = dma.vmem_to_hbm [thread:$0]  (%p2120_p12), %s2926_s26, 512, %s2924_s11, %s1582_s9  }
 0x46b PF: > { %s1608_s10 = sand.u32 1, %s1955_s27   ;;  %p3042_p10 = scmp.ne.s32.totalorder %s3000_s12, 0 }
 0x46c   : > { %p3043_p13 = scmp.ge.s32.totalorder %s1967_s30, 2  ;;  %s1609_s13 = scalar_lea.sflag [#allocation4], %s1608_s10 }
 0x46e   : > { %p1781_p3 = pnand %p3043_p13, %p3042_p10 }
 0x470   : > { %1950 = dma.done.wait (!%p1781_p3), %s1609_s13, 512  }
 0x471   : > { %1952 = vsyncadd (!%p1781_p3), %s1609_s13, 4294966784  ;;  %s3044_s30 = sld [smem:[#allocation11_spill]]  ;;  %s3045_s27 = smov %s1959_s28 }
 0x472   : > { %s3046_s28 = smov %s1963_s29  ;;  %s3047_s29 = smov %s2116_s23 }
 0x477   : > { %p22_p7 = scmp.ge.s32.totalorder %s3044_s30, 4  }
 0x479   :  { %24 = sbr.rel (!%p22_p7) target bundleno = 6 (0x6), region = 101 }
 0x480   :  { %1614 = vsyncpa [#allocation3], 1 }
 0x481   :  { %1616 = vsyncpa [#allocation3 + $0x1], 1 }
 0x482   :  { %1617 = vsyncpa [#allocation6], 1 }
 0x483   :  { %1618 = vsyncpa [#allocation4], 1 }
 0x484   :  { %1620 = vsyncpa [#allocation4 + $0x1], 1 }

</bundles_post_ra>
